<compile_context>
chip_gen: v5e
topology: v5e:2x2
jax: 0.10.0
libtpu: 0.0.40
codegen_flags: <defaults>
</compile_context>

<pallas_src>
import numpy as np
import jax
import jax.numpy as jnp
from jax.experimental import pallas as pl
from jax.experimental.pallas import tpu as pltpu


# ---------------------------------------------------------------------------
# Kernel
# ---------------------------------------------------------------------------
def _kernel(x_ref, w_ref, bias_ref, a_ref, bt_ref, o_ref, feat_ref):
    # x_ref   : (1, Cin, H, W)   input dtype (f32 or bf16) -- whole image, grid-resident
    # w_ref   : (1, Cg, Cin)     bf16  1x1-conv weight slice, BN scale folded in
    # bias_ref: (1, Cg, 1, 1)    f32   folded BN bias slice
    # a_ref   : (TH, H)          f32   row-interp rows for this output row tile
    # bt_ref  : (W, Wo)          bf16  column-interp matrix (transposed)
    # o_ref   : (1, Cg, TH, Wo)  out dtype
    # feat_ref: (Cg, H, Wo)      bf16 VMEM scratch: column-upsampled SiLU(BN(conv(x)))
    r = pl.program_id(2)

    @pl.when(r == 0)
    def _compute_features():
        x = x_ref[0]
        if x.dtype != jnp.bfloat16:            # trace-time decision; bf16 passes through
            x = x.astype(jnp.bfloat16)
        # 1x1 conv == channel contraction on the MXU (bf16 in, f32 accumulate).
        y = jnp.einsum('oi,ihw->ohw', w_ref[0], x,
                       preferred_element_type=jnp.float32)        # (Cg, H, W) f32
        # Folded BatchNorm (eval): scale already in w, only bias left.
        y = y + bias_ref[0]
        # SiLU (f32; sigmoid goes to the EUP).
        y = y * jax.nn.sigmoid(y)
        # Column interp applied ONCE per (image, group): scratch is lane-dense in Wo.
        feat = jnp.einsum('chw,wp->chp', y.astype(jnp.bfloat16), bt_ref[...],
                          preferred_element_type=jnp.float32)     # (Cg, H, Wo) f32
        feat_ref[...] = feat.astype(jnp.bfloat16)

    # Per row tile: one bf16 MXU matmul  A_tile (TH, H) x feat (Cg, H, Wo).
    a = a_ref[...].astype(jnp.bfloat16)
    out = jnp.einsum('th,chw->ctw', a, feat_ref[...],
                     preferred_element_type=jnp.float32)          # (Cg, TH, Wo) f32
    o_ref[0] = out.astype(o_ref.dtype)


# ---------------------------------------------------------------------------
# Host-side helpers
# ---------------------------------------------------------------------------
def _bilinear_matrix(n_in, n_out):
    """Interpolation matrix for nn.UpsamplingBilinear2d (align_corners=True)."""
    A = np.zeros((n_out, n_in), dtype=np.float32)
    if n_out == 1 or n_in == 1:
        A[:, 0] = 1.0
        return A
    for o in range(n_out):
        src = o * (n_in - 1) / (n_out - 1)
        i0 = int(np.floor(src))
        i1 = min(i0 + 1, n_in - 1)
        w1 = src - i0
        A[o, i0] += 1.0 - w1
        A[o, i1] += w1
    return A


def _ceil_to(x, m):
    return ((x + m - 1) // m) * m


def _tile_bytes(shape, dtype):
    """Approximate VMEM footprint of one tile, including (sublane, lane) padding."""
    itemsize = jnp.dtype(dtype).itemsize
    sub = {4: 8, 2: 16, 1: 32}.get(itemsize, 8)
    dims = list(shape)
    if dims:
        dims[-1] = _ceil_to(dims[-1], 128)
    if len(dims) >= 2:
        dims[-2] = _ceil_to(dims[-2], sub)
    n = 1
    for d in dims:
        n *= d
    return n * itemsize


def _physical_vmem_bytes():
    """Per-core VMEM capacity; conservative 64 MiB fallback (v7x floor)."""
    phys = None
    try:
        info = pltpu.get_tpu_info()
        for name in ("vmem_capacity_bytes", "vmem_bytes", "vmem_size_bytes"):
            v = getattr(info, name, None)
            if v:
                phys = int(v)
                break
    except Exception:
        phys = None
    return phys if phys else 64 * 1024 * 1024


def _pick_row_tile(Ho, step, fits):
    """Largest TH (multiple of `step`, dividing Ho) whose VMEM estimate fits."""
    if Ho % step != 0:
        # Odd output heights: fall back to whole-image rows (single row tile).
        return Ho
    cands = [t for t in range(Ho, 0, -step) if Ho % t == 0]
    for t in cands:
        if fits(t):
            return t
    return cands[-1]


# ---------------------------------------------------------------------------
# Public wrapper
# ---------------------------------------------------------------------------
def decoder_upsample(x_nchw, conv_w, gamma, beta, run_mean, run_var,
                     level_diff, eps=1e-5, block_rows=None, cout_groups=None,
                     out_dtype=jnp.float32):
    """DecoderUpsample forward.

    x_nchw : (N, Cin, H, W) activations (f32 or bf16).
    conv_w : (Cout, Cin) squeezed 1x1-conv weight (no bias).
    gamma, beta, run_mean, run_var : (Cout,) BatchNorm (eval-mode) parameters.
    out_dtype: set jnp.bfloat16 if the consumer allows it (halves HBM writeback).
    """
    N, Cin, H, W = x_nchw.shape
    Cout = conv_w.shape[0]
    scale_f = 2 ** level_diff
    Ho, Wo = H * scale_f, W * scale_f

    # Fold BN (eval mode) into the conv weight and a per-channel bias.
    inv_std = 1.0 / jnp.sqrt(run_var.astype(jnp.float32) + eps)
    scale = gamma.astype(jnp.float32) * inv_std                            # (Cout,)
    w_folded = (conv_w.astype(jnp.float32) * scale[:, None]).astype(jnp.bfloat16)
    bias = beta.astype(jnp.float32) - run_mean.astype(jnp.float32) * scale  # (Cout,)

    # Separable bilinear interpolation matrices (align_corners=True).
    A = jnp.asarray(_bilinear_matrix(H, Ho))                               # (Ho, H) f32
    Bt = jnp.asarray(_bilinear_matrix(W, Wo).T).astype(jnp.bfloat16)       # (W, Wo) bf16

    # ---- generation-aware VMEM budget --------------------------------------
    phys_vmem = _physical_vmem_bytes()
    # ~38 MiB cap on 64 MiB parts (v7x), ~96 MiB on 128 MiB parts (v5e/v6e).
    vmem_limit = int(phys_vmem * (0.6 if phys_vmem <= 64 * 1024 * 1024 else 0.75))
    budget = int(vmem_limit * 0.85)

    def vmem_estimate(th, cg):
        return (
            _tile_bytes((cg, H, Wo), jnp.bfloat16)              # feature scratch
            + 2 * _tile_bytes((1, Cin, H, W), x_nchw.dtype)     # x (double-buffered)
            + 2 * _tile_bytes((1, cg, Cin), jnp.bfloat16)       # w
            + 2 * _tile_bytes((1, cg, 1, 1), jnp.float32)       # bias
            + 2 * _tile_bytes((th, H), jnp.float32)             # A row tile
            + 2 * _tile_bytes((W, Wo), jnp.bfloat16)            # Bt
            + 2 * _tile_bytes((1, cg, th, Wo), out_dtype)       # output tile
            # r==0 transients: bf16 x copy, f32 conv/SiLU result, f32 col-interp result.
            + _tile_bytes((Cin, H, W), jnp.bfloat16)
            + _tile_bytes((cg, H, W), jnp.float32)
            + _tile_bytes((cg, H, Wo), jnp.float32))

    # bf16 output tiles want 16-row alignment on the second-to-last dim.
    step = 16 if jnp.dtype(out_dtype).itemsize == 2 else 8
    min_th = step if Ho % step == 0 else Ho

    # ---- Cout grouping (2nd parallel axis; VMEM knob) -----------------------
    if cout_groups is None:
        G = 2 if (N == 1 and Cout % 2 == 0) else 1   # keep both v7x TCs busy when N==1
        while (vmem_estimate(min_th, Cout // G) > budget
               and (Cout // G) % 2 == 0 and (Cout // G) >= 16):
            G *= 2                                    # shrink per-core scratch if tight
    else:
        G = int(cout_groups)
    assert Cout % G == 0, f"cout_groups={G} must divide Cout={Cout}"
    Cg = Cout // G

    # ---- row-tile selection --------------------------------------------------
    if block_rows is None:
        TH = _pick_row_tile(Ho, step, lambda t: vmem_estimate(t, Cg) <= budget)
    else:
        TH = int(block_rows)
    assert Ho % TH == 0 and (TH % step == 0 or TH == Ho), (
        f"block_rows={TH} must divide Ho={Ho} and be a multiple of {step} (or == Ho)")
    R = Ho // TH

    w_g = w_folded.reshape(G, Cg, Cin)
    bias_g = bias.reshape(G, Cg, 1, 1)

    out = pl.pallas_call(
        _kernel,
        out_shape=jax.ShapeDtypeStruct((N, Cout, Ho, Wo), out_dtype),
        grid_spec=pltpu.PrefetchScalarGridSpec(
            num_scalar_prefetch=0,
            grid=(N, G, R),                           # row tiles innermost (scratch reuse)
            in_specs=[
                # Whole input image; same block across (g, r) -> stays resident.
                pl.BlockSpec((1, Cin, H, W), lambda n, g, r: (n, 0, 0, 0)),
                # Per-group weight / bias slices (constant across n, r).
                pl.BlockSpec((1, Cg, Cin), lambda n, g, r: (g, 0, 0)),
                pl.BlockSpec((1, Cg, 1, 1), lambda n, g, r: (g, 0, 0, 0)),
                # Per-row-tile slice of the row-interp matrix.
                pl.BlockSpec((TH, H), lambda n, g, r: (r, 0)),
                # Grid-invariant column-interp matrix.
                pl.BlockSpec((W, Wo), lambda n, g, r: (0, 0)),
            ],
            out_specs=pl.BlockSpec((1, Cg, TH, Wo), lambda n, g, r: (n, g, r, 0)),
            scratch_shapes=[pltpu.VMEM((Cg, H, Wo), jnp.bfloat16)],
        ),
        compiler_params=pltpu.CompilerParams(
            # n, g independent (megacore); r reuses the per-(n,g) scratch -> arbitrary.
            dimension_semantics=("parallel", "parallel", "arbitrary"),
            vmem_limit_bytes=vmem_limit,
        ),
    )(x_nchw, w_g, bias_g, A, Bt)

    return out                                        # already NCHW


# ---------------------------------------------------------------------------
# Pure-JAX reference (same math as the PyTorch module, f32, no Pallas)
# ---------------------------------------------------------------------------
def _reference(x_nchw, conv_w, gamma, beta, run_mean, run_var, level_diff, eps=1e-5):
    N, Cin, H, W = x_nchw.shape
    scale_f = 2 ** level_diff
    Ho, Wo = H * scale_f, W * scale_f
    y = jnp.einsum('nchw,oc->nohw', x_nchw, conv_w)
    inv_std = 1.0 / jnp.sqrt(run_var + eps)
    y = (y - run_mean[None, :, None, None]) * (gamma * inv_std)[None, :, None, None] \
        + beta[None, :, None, None]
    y = y * jax.nn.sigmoid(y)
    A = jnp.asarray(_bilinear_matrix(H, Ho))
    B = jnp.asarray(_bilinear_matrix(W, Wo))
    return jnp.einsum('oh,nchw,pw->ncop', A, y, B)


if __name__ == "__main__":
    key = jax.random.PRNGKey(0)
    k1, k2, k3, k4, k5, k6 = jax.random.split(key, 6)

    level_diff = 1
    N, Cin, H, W = 2, 4, 16, 16
    Cout = 8

    x = jax.random.normal(k1, (N, Cin, H, W), dtype=jnp.float32)
    conv_w = jax.random.normal(k2, (Cout, Cin), dtype=jnp.float32) * 0.1   # 1x1 conv weight
    gamma = 1.0 + 0.1 * jax.random.normal(k3, (Cout,), dtype=jnp.float32)
    beta = 0.1 * jax.random.normal(k4, (Cout,), dtype=jnp.float32)
    run_mean = 0.05 * jax.random.normal(k5, (Cout,), dtype=jnp.float32)
    run_var = 1.0 + 0.1 * jax.random.uniform(k6, (Cout,), dtype=jnp.float32)

    ref = _reference(x, conv_w, gamma, beta, run_mean, run_var, level_diff)

    # (1) Row-tiled path: TH=8 -> 4 row tiles per image, exercises scratch reuse.
    out1 = decoder_upsample(x, conv_w, gamma, beta, run_mean, run_var,
                            level_diff, block_rows=8)
    out1 = jax.block_until_ready(out1)
    assert out1.shape == (N, Cout, H * 2 ** level_diff, W * 2 ** level_diff)
    # Looser tolerance: conv + upsample matmuls run in bf16 (f32 accumulation).
    np.testing.assert_allclose(np.asarray(out1), np.asarray(ref), rtol=2e-2, atol=2e-2)

    # (2) Auto tiling + Cout split into 2 parallel groups (v7x-style 2nd parallel axis).
    out2 = decoder_upsample(x, conv_w, gamma, beta, run_mean, run_var,
                            level_diff, cout_groups=2)
    out2 = jax.block_until_ready(out2)
    assert out2.shape == out1.shape
    np.testing.assert_allclose(np.asarray(out2), np.asarray(ref), rtol=2e-2, atol=2e-2)

    print("KERNEL_OK")
</pallas_src>

<mosaic_0001>
module attributes {stable_mosaic.version = 11 : i64} {
  func.func @_kernel(%arg0: i32, %arg1: i32, %arg2: i32, %arg3: memref<1x4x16x16xf32, #tpu.memory_space<vmem>>, %arg4: memref<1x8x4xbf16, #tpu.memory_space<vmem>>, %arg5: memref<1x8x1x1xf32, #tpu.memory_space<vmem>>, %arg6: memref<8x16xf32, #tpu.memory_space<vmem>>, %arg7: memref<16x32xbf16, #tpu.memory_space<vmem>>, %arg8: memref<1x8x8x32xf32, #tpu.memory_space<vmem>>, %arg9: memref<8x16x32xbf16, #tpu.memory_space<vmem>>) attributes {dimension_semantics = [#tpu.dimension_semantics<parallel>, #tpu.dimension_semantics<parallel>, #tpu.dimension_semantics<arbitrary>], iteration_bounds = array<i64: 2, 1, 4>, scalar_prefetch = 0 : i64, scratch_operands = 1 : i64, tpu.core_type = #tpu.core_type<tc>, window_params = [{transform_indices = @transform_0, window_bounds = array<i64: 1, 4, 16, 16>}, {transform_indices = @transform_1, window_bounds = array<i64: 1, 8, 4>}, {transform_indices = @transform_2, window_bounds = array<i64: 1, 8, 1, 1>}, {transform_indices = @transform_3, window_bounds = array<i64: 8, 16>}, {pipeline_mode = #tpu.pipeline_mode<synchronous>, transform_indices = @transform_4, window_bounds = array<i64: 16, 32>}, {transform_indices = @transform_5, window_bounds = array<i64: 1, 8, 8, 32>}]} {
    %c0_i32 = arith.constant 0 : i32
    %0 = arith.cmpi eq, %arg2, %c0_i32 : i32
    %1 = arith.extui %0 : i1 to i32
    %c0_i32_0 = arith.constant 0 : i32
    %2 = arith.cmpi ne, %1, %c0_i32_0 : i32
    scf.if %2 {
      %c0_9 = arith.constant 0 : index
      %c0_10 = arith.constant 0 : index
      %c0_11 = arith.constant 0 : index
      %c0_12 = arith.constant 0 : index
      %11 = vector.load %arg3[%c0_9, %c0_10, %c0_11, %c0_12] : memref<1x4x16x16xf32, #tpu.memory_space<vmem>>, vector<1x4x16x16xf32>
      %12 = vector.shape_cast %11 : vector<1x4x16x16xf32> to vector<4x16x16xf32>
      %13 = arith.truncf %12 : vector<4x16x16xf32> to vector<4x16x16xbf16>
      %c0_13 = arith.constant 0 : index
      %c0_14 = arith.constant 0 : index
      %c0_15 = arith.constant 0 : index
      %14 = vector.load %arg4[%c0_13, %c0_14, %c0_15] : memref<1x8x4xbf16, #tpu.memory_space<vmem>>, vector<1x8x4xbf16>
      %15 = vector.shape_cast %14 : vector<1x8x4xbf16> to vector<8x4xbf16>
      "tpu.trace_start"() <{level = 10 : i32, message = "oi,ihw->ohw"}> : () -> ()
      %cst_16 = arith.constant dense<0.000000e+00> : vector<8x16x16xf32>
      %16 = tpu.matmul %15, %13, %cst_16 {dimension_numbers = #tpu.dot_dimension_numbers<[1], [0], [0], [1, 2], [0, 0, 1, 1, 1, 2], [], []>} : vector<8x4xbf16>, vector<4x16x16xbf16>, vector<8x16x16xf32> -> vector<8x16x16xf32>
      "tpu.trace_stop"() : () -> ()
      %c0_17 = arith.constant 0 : index
      %c0_18 = arith.constant 0 : index
      %c0_19 = arith.constant 0 : index
      %c0_20 = arith.constant 0 : index
      %17 = vector.load %arg5[%c0_17, %c0_18, %c0_19, %c0_20] : memref<1x8x1x1xf32, #tpu.memory_space<vmem>>, vector<1x8x1x1xf32>
      %18 = vector.shape_cast %17 : vector<1x8x1x1xf32> to vector<8x1x1xf32>
      %19 = vector.broadcast %18 : vector<8x1x1xf32> to vector<8x16x16xf32>
      %20 = arith.addf %16, %19 : vector<8x16x16xf32>
      %21 = arith.negf %20 : vector<8x16x16xf32>
      %22 = math.exp %21 : vector<8x16x16xf32>
      %cst_21 = arith.constant 1.000000e+00 : f32
      %23 = vector.broadcast %cst_21 : f32 to vector<8x16x16xf32>
      %24 = arith.addf %23, %22 : vector<8x16x16xf32>
      %25 = arith.divf %23, %24 : vector<8x16x16xf32>
      %26 = arith.mulf %20, %25 : vector<8x16x16xf32>
      %27 = arith.truncf %26 : vector<8x16x16xf32> to vector<8x16x16xbf16>
      %c0_22 = arith.constant 0 : index
      %c0_23 = arith.constant 0 : index
      %28 = vector.load %arg7[%c0_22, %c0_23] : memref<16x32xbf16, #tpu.memory_space<vmem>>, vector<16x32xbf16>
      "tpu.trace_start"() <{level = 10 : i32, message = "chw,wp->chp"}> : () -> ()
      %cst_24 = arith.constant dense<0.000000e+00> : vector<8x16x32xf32>
      %29 = tpu.matmul %27, %28, %cst_24 {dimension_numbers = #tpu.dot_dimension_numbers<[2], [0], [0, 1], [1], [0, 0, 0, 1, 1, 1], [], []>} : vector<8x16x16xbf16>, vector<16x32xbf16>, vector<8x16x32xf32> -> vector<8x16x32xf32>
      "tpu.trace_stop"() : () -> ()
      %30 = arith.truncf %29 : vector<8x16x32xf32> to vector<8x16x32xbf16>
      %c0_25 = arith.constant 0 : index
      %c0_26 = arith.constant 0 : index
      %c0_27 = arith.constant 0 : index
      %31 = vector.load %arg9[%c0_25, %c0_26, %c0_27] : memref<8x16x32xbf16, #tpu.memory_space<vmem>>, vector<8x16x32xbf16>
      tpu.vector_store %arg9[%c0_25, %c0_26, %c0_27], %30 {strides = array<i32>} : memref<8x16x32xbf16, #tpu.memory_space<vmem>>, vector<8x16x32xbf16>,
    } else {
    }
    %c0 = arith.constant 0 : index
    %c0_1 = arith.constant 0 : index
    %3 = vector.load %arg6[%c0, %c0_1] : memref<8x16xf32, #tpu.memory_space<vmem>>, vector<8x16xf32>
    %4 = arith.truncf %3 : vector<8x16xf32> to vector<8x16xbf16>
    %c0_2 = arith.constant 0 : index
    %c0_3 = arith.constant 0 : index
    %c0_4 = arith.constant 0 : index
    %5 = vector.load %arg9[%c0_2, %c0_3, %c0_4] : memref<8x16x32xbf16, #tpu.memory_space<vmem>>, vector<8x16x32xbf16>
    "tpu.trace_start"() <{level = 10 : i32, message = "th,chw->ctw"}> : () -> ()
    %cst = arith.constant dense<0.000000e+00> : vector<8x32x8xf32>
    %6 = tpu.matmul %5, %4, %cst {dimension_numbers = #tpu.dot_dimension_numbers<[1], [1], [0, 2], [0], [0, 0, 0, 2, 1, 0], [], []>} : vector<8x16x32xbf16>, vector<8x16xbf16>, vector<8x32x8xf32> -> vector<8x32x8xf32>
    %7 = tpu.transpose %6, [0, 2, 1] : vector<8x32x8xf32> -> vector<8x8x32xf32>
    "tpu.trace_stop"() : () -> ()
    %c0_5 = arith.constant 0 : index
    %c0_6 = arith.constant 0 : index
    %c0_7 = arith.constant 0 : index
    %c0_8 = arith.constant 0 : index
    %8 = vector.load %arg8[%c0_5, %c0_6, %c0_7, %c0_8] : memref<1x8x8x32xf32, #tpu.memory_space<vmem>>, vector<1x8x8x32xf32>
    %9 = vector.shape_cast %8 : vector<1x8x8x32xf32> to vector<8x8x32xf32>
    %10 = vector.shape_cast %7 : vector<8x8x32xf32> to vector<1x8x8x32xf32>
    tpu.vector_store %arg8[%c0_5, %c0_6, %c0_7, %c0_8], %10 {strides = array<i32>} : memref<1x8x8x32xf32, #tpu.memory_space<vmem>>, vector<1x8x8x32xf32>,
    return
  }
  func.func @transform_0(%arg0: i32, %arg1: i32, %arg2: i32) -> (i32, i32, i32, i32) {
    %c0_i32 = arith.constant 0 : i32
    %c0_i32_0 = arith.constant 0 : i32
    %c0_i32_1 = arith.constant 0 : i32
    %c0_i32_2 = arith.constant 0 : i32
    return %arg0, %c0_i32, %c0_i32_0, %c0_i32_1 : i32, i32, i32, i32
  }
  func.func @transform_1(%arg0: i32, %arg1: i32, %arg2: i32) -> (i32, i32, i32) {
    %c0_i32 = arith.constant 0 : i32
    %c0_i32_0 = arith.constant 0 : i32
    %c0_i32_1 = arith.constant 0 : i32
    return %arg1, %c0_i32, %c0_i32_0 : i32, i32, i32
  }
  func.func @transform_2(%arg0: i32, %arg1: i32, %arg2: i32) -> (i32, i32, i32, i32) {
    %c0_i32 = arith.constant 0 : i32
    %c0_i32_0 = arith.constant 0 : i32
    %c0_i32_1 = arith.constant 0 : i32
    %c0_i32_2 = arith.constant 0 : i32
    return %arg1, %c0_i32, %c0_i32_0, %c0_i32_1 : i32, i32, i32, i32
  }
  func.func @transform_3(%arg0: i32, %arg1: i32, %arg2: i32) -> (i32, i32) {
    %c0_i32 = arith.constant 0 : i32
    %c0_i32_0 = arith.constant 0 : i32
    return %arg2, %c0_i32 : i32, i32
  }
  func.func @transform_4(%arg0: i32, %arg1: i32, %arg2: i32) -> (i32, i32) {
    %c0_i32 = arith.constant 0 : i32
    %c0_i32_0 = arith.constant 0 : i32
    %c0_i32_1 = arith.constant 0 : i32
    return %c0_i32, %c0_i32_0 : i32, i32
  }
  func.func @transform_5(%arg0: i32, %arg1: i32, %arg2: i32) -> (i32, i32, i32, i32) {
    %c0_i32 = arith.constant 0 : i32
    %c0_i32_0 = arith.constant 0 : i32
    return %arg0, %arg1, %arg2, %c0_i32 : i32, i32, i32, i32
  }
}

</mosaic_0001>

<bundles_post_ra>
// kernel: tpu_custom_call.1
= control target key start
LH: loop header
LB: loop body
LE: loop exit
PB: predicated region body
PF: predicated region fallthrough
CT: control target
= control target key end

     0   :  { %10 = vsyncpa [#allocation4], 0  ;;  %s3728_s0 = inlined_call_operand.hbm [shape: f32[2,4,16,16], index: 0, kind: input, shape index: {}]   ;;  %s3729_s1 = inlined_call_operand.vmem [shape: bf16[1,8,4], index: 1, kind: input, shape index: {}]   ;;  %s3730_s2 = inlined_call_operand.vmem [shape: f32[1,8,1,1], index: 2, kind: input, shape index: {}]   ;;  %s3731_s3 = inlined_call_operand.vmem [shape: f32[32,16], index: 3, kind: input, shape index: {}]   ;;  %s3732_s4 = inlined_call_operand.vmem [shape: bf16[16,32], index: 4, kind: input, shape index: {}]   ;;  %s3733_s5 = inlined_call_operand.hbm [shape: f32[2,8,32,32], index: 5, kind: output, shape index: {}]  }
   0x1   :  { %12 = vsyncpa [#allocation4 + $0x1], 0 }
   0x2   :  { %13 = vsyncpa [#allocation5], 0 }
   0x3   :  { %15 = vsyncpa [#allocation5 + $0x1], 0  ;;  %s2853_s18 = smov 0   ;;  %s2855_s19 = smov 0  }
   0x4   :  { %s2857_s20 = smov 0   ;;  %s2859_s21 = smov 0  }
   0x5   :  { %s2861_s22 = smov 0   ;;  %s2863_s23 = smov 0  }
   0x6   :  { %s2865_s24 = smov 0   ;;  %s2867_s25 = smov 0  }
   0x7   :  { %s2869_s26 = smov 0   ;;  %s2871_s27 = smov 0  }
   0x8   :  { %s2873_s28 = smov 0  }
   0x9 LB: > { %3747 = sst [smem:[#allocation9_spill]] %s2798_s26  ;;  %s2328_s29 = sadd.s32 4294967295, %s2806_s28   ;;  %s2806_s28 = sphi %s2873_s28, %s21_s28   ;;  %s2802_s27 = sphi %s2871_s27, %s3793_s27   ;;  %s2798_s26 = sphi %s2869_s26, %s3792_s26   ;;  %s2794_s25 = sphi %s2867_s25, %s3791_s25   ;;  %s2790_s24 = sphi %s2865_s24, %s3790_s24   ;;  %s2786_s23 = sphi %s2863_s23, %s3799_s23   ;;  %s2782_s22 = sphi %s2861_s22, %s3798_s22   ;;  %s2778_s21 = sphi %s2859_s21, %s3797_s21   ;;  %s2774_s20 = sphi %s2857_s20, %s3796_s20   ;;  %s2770_s19 = sphi %s2855_s19, %s3795_s19   ;;  %s2766_s18 = sphi %s2853_s18, %s3794_s18  }
   0xa   : > { %3748 = sst [smem:[#allocation10_spill]] %s2802_s27  ;;  %s2329_s30 = sadd.s32 4294967294, %s2806_s28  }
   0xb   : > { %s33_s6 = sadd.s32 1, %s2798_s26  ;;  %s40_s7 = sadd.s32 1, %s2802_s27 }
   0xc   : > { %p34_p0 = scmp.ge.s32.totalorder %s33_s6, 4  ;;  %s47_s8 = sadd.s32 1, %s2786_s23 }
   0xd   : > { %p54_p1 = scmp.ne.s32.totalorder %s2786_s23, %s2782_s22  ;;  %p55_p2 = scmp.eq.s32.totalorder %s2806_s28, 0 }
   0xe   : > { %s3801_s6 = smov (%p34_p0, %s33_s6), 0  ;;  %s3803_s7 = smov (!%p34_p0, %s40_s7), %s2802_s27 }
   0xf   : > { %3749 = sst [smem:[#allocation11_spill]] %s3801_s6  ;;  %p2917_p3 = por %p55_p2, %p54_p1 }
  0x10   : > { %p60_p4 = scmp.ne.s32.totalorder %s2782_s22, %s2778_s21  ;;  %p42_p5 = scmp.ge.s32.totalorder %s3803_s7, 2 }
  0x11   : > { %p61_p6 = scmp.eq.s32.totalorder %s2328_s29, 0  ;;  %s172_s10 = ssub.s32 %s2798_s26, %s3801_s6 }
  0x12   : > { %s176_s11 = sadd.s32 1, %s2774_s20  ;;  %s3805_s7 = smov (%p42_p5, %s3803_s7), 0 }
  0x13   : > { %3751 = sst [smem:[#allocation12_spill]] %s3805_s7  ;;  %p2927_p7 = por %p61_p6, %p60_p4 }
  0x14   : > { %p186_p8 = scmp.ne.s32.totalorder %s2774_s20, %s2770_s19  ;;  %s44_s13 = ssub.s32 %s2802_s27, %s3805_s7 }
  0x15   : > { %p187_p9 = scmp.eq.s32.totalorder %s2328_s29, 7  ;;  %p45_p10 = scmp.eq.s32.totalorder %s44_s13, 0 }
  0x16   : > { %s173_s14 = sor.u32 %s172_s10, %s44_s13  ;;  %p192_p13 = scmp.ne.s32.totalorder %s2770_s19, %s2766_s18 }
  0x17   : > { %p174_p11 = scmp.eq.s32.totalorder %s173_s14, 0  ;;  %p2935_p12 = por %p187_p9, %p186_p8 }
  0x18   : > { %s2940_s16 = scalar_select %p45_p10, %s2786_s23, %s47_s8  }
  0x19   : > { %s2943_s17 = scalar_select %p174_p11, %s2774_s20, %s176_s11  }
  0x1a   : > { %3754 = sst [smem:[#allocation13_spill]] %s2940_s16  ;;  %p193_p0 = scmp.eq.s32.totalorder %s2329_s30, 7 }
  0x1b   : > { %3755 = sst [smem:[#allocation14_spill]] %s2943_s17  ;;  %p2452_p1 = scmp.lt.s32.totalorder %s2806_s28, 8 }
  0x1c   : > { %p2948_p2 = por %p193_p0, %p192_p13  ;;  %s230_s29 = sand.u32 1, %s2786_s23  }
  0x1d   : > { %s2334_s10 = sshll.u32 %s230_s29, 6  ;;  %s2425_s13 = sshll.u32 %s2802_s27, 6 }
  0x1e   : > { %s239_s6 = scalar_lea.hbm %s3728_s0, %s2425_s13  ;;  %s234_s8 = scalar_lea.vmem [#allocation3], %s2334_s10 }
  0x1f   : > { %s242_s26 = sshll.u32 %s234_s8, 4  ;;  %s240_s16 = sshll.u32 %s239_s6, 4  ;;  %s243_s26 = int_to_ptr.vmem [resolvable:$true] %s242_s26  ;;  %s241_s16 = int_to_ptr.hbm [resolvable:$true] %s240_s16 }
  0x20   : > { %p2445_p4 = pnand %p2452_p1, %p2917_p3  ;;  %p2337_p5 = scmp.ge.s32.totalorder %s2806_s28, 1 }
  0x21   : > { %s231_s30 = scalar_lea.sflag [#allocation4], %s230_s29  ;;  %s2808_s11 = smov 128  }
  0x22   : > { %s2809_s17 = smov 8   ;;  %p257_p6 = scmp.lt.s32.totalorder %s2806_s28, 9 }
  0x23   : > { %2447 = dma.hbm_to_vmem [thread:$0]  (!%p2445_p4), %s241_s16, 1024, %s243_s26, %s231_s30, %s2808_s11, %s2808_s11, %s2809_s17  }
  0x24   : > { %p258_p8 = pnand %p2337_p5, %p257_p6 }
  0x25   : > { %s263_s27 = sand.u32 (!%p258_p8), 1, %s2782_s22  }
  0x26   : > { %261 = sbr.rel (%p258_p8) target bundleno = 1351 (0x547), region = 40  ;;  %s2338_s7 = sshll.u32 (!%p258_p8), %s263_s27, 6 }
  0x27   : > { %s264_s13 = scalar_lea.sflag (!%p258_p8), [#allocation4], %s263_s27  ;;  %s267_s10 = scalar_lea.vmem (!%p258_p8), [#allocation3], %s2338_s7 }
  0x2b   : > { %2757 = dma.done.wait (%p2927_p7), %s264_s13, 1024  }
  0x2c   : > { %2759 = vsyncadd (%p2927_p7), %s264_s13, 4294966272  ;;  %s3738_s6 = sand.u32 1, %s2770_s19   ;;  %p315_p3 = scmp.lt.s32.totalorder %s2790_s24, 3 }
  0x2d   : > { %s2339_s26 = sshll.u32 %s3738_s6, 6  ;;  %p2341_p9 = scmp.ne.s32.totalorder %s2790_s24, 0 }
  0x2e   : > { %s316_s9 = scalar_select %p315_p3, %s2790_s24, 3 }
  0x2f   : > { %s2976_s14 = scalar_lea.vmem [#allocation6], %s2339_s26  ;;  %324 = sbr.rel (%p2341_p9) target bundleno = 762 (0x2fa), region = 48 }
  0x30   : > { %s2340_s16 = sshll.u32 %s316_s9, 3  ;;  %s3739_s12 = smov (!%p2341_p9), 64  }
  0x31   : > { %s2974_s27 = scalar_lea.vmem %s3731_s3, %s2340_s16  ;;  %s2813_s8 = smov (!%p2341_p9), 16  }
  0x32   : > { %s3741_s30 = smov (!%p2341_p9), 80   ;;  %s2816_s11 = smov (!%p2341_p9), 48  }
  0x33   : > { %s2817_s7 = smov (!%p2341_p9), 32   ;;  %s3745_s13 = smov (!%p2341_p9), 96  }
  0x34   : > { %v325_v0 = vld [vmem:[%s267_s10] sm:$0xff]  ;;  %v327_v1 = vld [vmem:[%s267_s10 + $0x10] sm:$0xff]  ;;  %vm433_vm0 = vcmask 1047556   ;;  %v2810_v7 = vmov 1983009808   ;;  %v326_v9 = vld [vmem:[%s267_s10 + $0x8] sm:$0xff] }
  0x35   : > { %v329_v2 = vld [vmem:[%s267_s10 + $0x20] sm:$0xff]  ;;  %v331_v3 = vld [vmem:[%s267_s10 + $0x30] sm:$0xff]  ;;  %v333_v4 = vpack.c.bf16 %v325_v0, %v325_v0  ;;  %v335_v5 = vpack.c.bf16 %v327_v1, %v327_v1  ;;  %v424_v8 = vunpack.c.l.s4 %v2810_v7  ;;  %v328_v10 = vld [vmem:[%s267_s10 + $0x18] sm:$0xff]  ;;  %v334_v14 = vpack.c.bf16 %v326_v9, %v326_v9  ;;  %s3758_s29 = smov 64   ;;  %s3759_s26 = smov 96  }
  0x36   : > { %v337_v6 = vpack.c.bf16 %v329_v2, %v329_v2  ;;  %v339_v11 = vpack.c.bf16 %v331_v3, %v331_v3  ;;  %v330_v12 = vld [vmem:[%s267_s10 + $0x28] sm:$0xff]  ;;  %v332_v13 = vld [vmem:[%s267_s10 + $0x38] sm:$0xff]  ;;  %v336_v15 = vpack.c.bf16 %v328_v10, %v328_v10  ;;  %v2811_v18 = vmov 1934713408   ;;  %s3743_s10 = smov 112   ;;  %s3760_s9 = smov 112  }
  0x37   : > { %v400_v16 = vpack.i.b16 %v335_v5, %v333_v4  ;;  %v2979_v17 = vunpack.c.0.s8 %v424_v8  ;;  %v438_v19 = vunpack.c.l.s4 %v2811_v18  ;;  %v401_v20 = vshrl.u32 %v333_v4, 16 }
  0x38   : > { %v406_v21 = vpack.i.b16 %v339_v11, %v337_v6  ;;  %v402_v22 = vshrl.u32 %v335_v5, 16  ;;  %v407_v23 = vshrl.u32 %v337_v6, 16  ;;  %v408_v24 = vshrl.u32 %v339_v11, 16 }
  0x39   : > { %v426_v25 = vperm.slane %v400_v16, %v2979_v17  ;;  %v2982_v26 = vunpack.c.0.s8 %v438_v19  ;;  %v338_v27 = vpack.c.bf16 %v330_v12, %v330_v12  ;;  %v340_v28 = vpack.c.bf16 %v332_v13, %v332_v13 }
  0x3a   : > { %v431_v29 = vperm.slane %v406_v21, %v2979_v17  ;;  %v403_v30 = vpack.i.b16 %v402_v22, %v401_v20  ;;  %v409_v31 = vpack.i.b16 %v408_v24, %v407_v23  ;;  %v413_v32 = vshrl.u32 %v334_v14, 16 }
  0x3b   : > { %v435_v33 = vrot.slane %v426_v25, 4  ;;  %v414_v34 = vshrl.u32 %v336_v15, 16  ;;  %v419_v35 = vshrl.u32 %v338_v27, 16  ;;  %v420_v36 = vshrl.u32 %v340_v28, 16 }
  0x3c   : > { %v432_v37 = vrot.slane %v431_v29, 4  ;;  %v453_v38 = vperm.slane %v403_v30, %v2979_v17  ;;  %v458_v39 = vperm.slane %v409_v31, %v2979_v17  ;;  %v412_v43 = vpack.i.b16 %v336_v15, %v334_v14 }
  0x3d   : > { %v436_v40 = vsel %vm433_vm0, %v431_v29, %v435_v33  ;;  %v415_v41 = vpack.i.b16 %v414_v34, %v413_v32  ;;  %v421_v42 = vpack.i.b16 %v420_v36, %v419_v35  ;;  %v418_v51 = vpack.i.b16 %v340_v28, %v338_v27 }
  0x3e   : > { %v444_v44 = vperm.slane %v436_v40, %v2982_v26  ;;  %v459_v45 = vrot.slane %v458_v39, 4  ;;  %v434_v46 = vsel %vm433_vm0, %v432_v37, %v426_v25  ;;  %v461_v47 = vrot.slane %v453_v38, 4 }
  0x3f   : > { %v2991_v48 = vperm.slane %v434_v46, %v2982_v26  ;;  %v505_v49 = vperm.slane %v415_v41, %v2979_v17  ;;  %v510_v50 = vperm.slane %v421_v42, %v2979_v17  ;;  %v479_v2 = vperm.slane %v412_v43, %v2979_v17 }
  0x40   : > { %v543_v52 = vunpack.c.l.b16 %v444_v44  ;;  %v447_v53 = vrot.slane %v444_v44, 4  ;;  %v460_v54 = vsel %vm433_vm0, %v459_v45, %v453_v38  ;;  %v462_v55 = vsel %vm433_vm0, %v458_v39, %v461_v47 }
  0x41   : > { %v466_v56 = vperm.slane %v460_v54, %v2982_v26  ;;  %v445_v57 = vrot.slane %v2991_v48, 4  ;;  %v470_v58 = vperm.slane %v462_v55, %v2982_v26  ;;  %v511_v59 = vrot.slane %v510_v50, 4  ;;  %v2564_v54 = vld [vmem:[%s3730_s2 + $0x3] ss:$0 sm:$0xff]  ;;  %v2562_v55 = vld [vmem:[%s3730_s2 + $0x1] ss:$0 sm:$0xff] }
  0x42   : > { %v544_v60 = vpack.c.b16 %v543_v52, %v543_v52  ;;  %v448_v1 = vsel %vm433_vm0, 0, %v447_v53  ;;  %v484_v3 = vperm.slane %v418_v51, %v2979_v17  ;;  %v487_v15 = vrot.slane %v479_v2, 4 }
  0x43   : > { %v528_v61 = vunpack.c.l.b16 %v466_v56  ;;  %v471_v62 = vrot.slane %v466_v56, 4  ;;  %v548_v63 = vunpack.c.l.b16 %v470_v58  ;;  %v446_v0 = vsel %vm433_vm0, 0, %v445_v57  ;;  %v2563_v56 = vld [vmem:[%s3730_s2 + $0x6] ss:$0 sm:$0xff]  ;;  %v2567_v57 = vld [vmem:[%s3730_s2 + $0x2] ss:$0 sm:$0xff] }
  0x44   : > { %545 = vrot.lane.b32.xlu1 %v544_v60, %s3739_s12  ;;  %v512_v7 = vsel %vm433_vm0, %v511_v59, %v505_v49  ;;  %v533_v9 = vunpack.c.l.b16 %v446_v0  ;;  %v553_v10 = vunpack.c.l.b16 %v448_v1  ;;  %v485_v11 = vrot.slane %v484_v3, 4  ;;  %v2566_v59 = vld [vmem:[%s3730_s2 + $0x5] ss:$0 sm:$0xff]  ;;  %v2569_v60 = vld [vmem:[%s3730_s2 + $0x4] ss:$0 sm:$0xff] }
  0x45   : > { %v529_v4 = vpack.c.b16 %v528_v61, %v528_v61  ;;  %v472_v5 = vsel %vm433_vm0, 0, %v471_v62  ;;  %v549_v6 = vpack.c.b16 %v548_v63, %v548_v63  ;;  %v473_v13 = vrot.slane %v470_v58, 4  ;;  %v2565_v58 = vld [vmem:[%s3730_s2 + $0x7] ss:$0 sm:$0xff]  ;;  %v2568_v61 = vld [vmem:[%s3730_s2] ss:$0 sm:$0xff] }
  0x46   : > { %v538_v8 = vunpack.c.l.b16 %v472_v5  ;;  %v518_v14 = vperm.slane %v512_v7, %v2982_v26  ;;  %v486_v16 = vsel %vm433_vm0, %v485_v11, %v479_v2  ;;  %v2815_v18 = vmov 0  }
  0x47   : > { %530 = vrot.lane.b32.xlu0 %v529_v4, %s2813_s8  ;;  %550 = vrot.lane.b32.xlu2 %v549_v6, %s3741_s30  ;;  %v513_v19 = vrot.slane %v505_v49, 4  ;;  %v3012_v20 = vperm.slane %v486_v16, %v2982_v26  ;;  %v534_v21 = vpack.c.b16 %v533_v9, %v533_v9  ;;  %v554_v22 = vpack.c.b16 %v553_v10, %v553_v10 }
  0x48   : > { %v539_v12 = vpack.c.b16 %v538_v8, %v538_v8  ;;  %2561 = vset.pattern.permute.xlu1 %v2815_v18  ;;  %2560 = vset.pattern.permute.xlu0 %v2815_v18  ;;  %v563_v23 = vunpack.c.l.b16 %v518_v14  ;;  %v474_v24 = vsel %vm433_vm0, 0, %v473_v13  ;;  %v488_v27 = vsel %vm433_vm0, %v484_v3, %v487_v15  ;;  %v341_v15 = vld [vmem:[%s3729_s1] sm:$0xf] }
  0x49   : > { %2559 = vset.pattern.permute.xlu2 %v2815_v18  ;;  %v497_v25 = vrot.slane %v3012_v20, 4  ;;  %v514_v29 = vsel %vm433_vm0, %v510_v50, %v513_v19  ;;  %v558_v30 = vunpack.c.l.b16 %v474_v24  ;;  %v496_v33 = vperm.slane %v488_v27, %v2982_v26 }
  0x4a   : > { %v564_v32 = vpack.c.b16 %v563_v23, %v563_v23  ;;  %v523_v34 = vrot.slane %v518_v14, 4  ;;  %v522_v35 = vperm.slane %v514_v29, %v2982_v26  ;;  %vm597_vm1 = vcmask 130048  }
  0x4b   : > { %v498_v28 = vsel %vm433_vm0, 0, %v497_v25  ;;  %v559_v36 = vpack.c.b16 %v558_v30, %v558_v30  ;;  %v578_v38 = vunpack.c.l.b16 %v496_v33  ;;  %v499_v44 = vrot.slane %v496_v33, 4 }
  0x4c   : > { %540 = vrot.lane.b32.xlu1 %v539_v12, %s2816_s11  ;;  %v568_v31 = vunpack.c.l.b16 %v498_v28  ;;  %v524_v39 = vsel %vm433_vm0, 0, %v523_v34  ;;  %v525_v40 = vrot.slane %v522_v35, 4  ;;  %v583_v42 = vunpack.c.l.b16 %v522_v35 }
  0x4d   : > { %v573_v41 = vunpack.c.l.b16 %v524_v39  ;;  %v579_v43 = vpack.c.b16 %v578_v38, %v578_v38  ;;  %v500_v50 = vsel %vm433_vm0, 0, %v499_v44  ;;  %vm601_vm2 = vcmask 261120  }
  0x4e   : > { %v569_v37 = vpack.c.b16 %v568_v31, %v568_v31  ;;  %v526_v45 = vsel %vm433_vm0, 0, %v525_v40  ;;  %v584_v47 = vpack.c.b16 %v583_v42, %v583_v42  ;;  %v588_v51 = vunpack.c.l.b16 %v500_v50 }
  0x4f   : > { %535 = vrot.lane.b32.xlu0 %v534_v21, %s2817_s7  ;;  %555 = vrot.lane.b32.xlu2 %v554_v22, %s3745_s13  ;;  %v574_v46 = vpack.c.b16 %v573_v41, %v573_v41  ;;  %v593_v49 = vunpack.c.l.b16 %v526_v45  ;;  %vm604_vm3 = vcmask 392192   ;;  %vm607_vm4 = vcmask 523264  }
  0x50   : > { %v589_v53 = vpack.c.b16 %v588_v51, %v588_v51  ;;  %vm610_vm5 = vcmask 654336   ;;  %vm613_vm6 = vcmask 785408   ;;  %vm616_vm7 = vcmask 916480  }
  0x51   : > { %v594_v52 = vpack.c.b16 %v593_v49, %v593_v49  ;;  %vm786_vm8 = vcmask 1041408   ;;  %vm782_vm9 = vcmask 31744  }
  0x54   : > { %565 = vrot.lane.b32.xlu1 %v564_v32, %s2813_s8 }
  0x57   : > { %560 = vrot.lane.b32.xlu0 %v559_v36, %s3743_s10  ;;  %570 = vrot.lane.b32.xlu2 %v569_v37, %s2817_s7 }
  0x5c   : > { %580 = vrot.lane.b32.xlu1 %v579_v43, %s3739_s12 }
  0x5f   : > { %575 = vrot.lane.b32.xlu0 %v574_v46, %s2816_s11  ;;  %585 = vrot.lane.b32.xlu2 %v584_v47, %s3741_s30 }
  0x64   : > { %595 = vrot.lane.b32.xlu1 %v594_v52, %s3743_s10  ;;  %s3757_s10 = smov 80  }
  0x67   : > { %590 = vrot.lane.b32.xlu0 %v589_v53, %s3745_s13  ;;  %379 = vperm.xlu2 %2559, %v2564_v54  }
  0x6c   : > { %371 = vperm.xlu1 %2561, %v2562_v55  }
  0x6f   : > { %391 = vperm.xlu0 %2560, %v2563_v56   ;;  %375 = vperm.xlu2 %2559, %v2567_v57  }
  0x74   : > { %395 = vperm.xlu1 %2561, %v2565_v58  }
  0x77   : > { %387 = vperm.xlu0 %2560, %v2566_v59   ;;  %383 = vperm.xlu2 %2559, %v2569_v60  }
  0x7c   : > { %367 = vperm.xlu1 %2561, %v2568_v61  }
  0xa1   : > { %v551_v62 = vpop.permute.xlu2 %550 }
  0xa9   : > { %v556_v63 = vpop.permute.xlu2 %555 }
  0xb1   : > { %v571_v2 = vpop.permute.xlu2 %570 }
  0xb6   : > { %v546_v0 = vpop.permute.xlu1 %545 }
  0xb9   : > { %v531_v1 = vpop.permute.xlu0 %530  ;;  %v586_v9 = vpop.permute.xlu2 %585 }
  0xba   : > { %v600_v4 = vsel %vm597_vm1, %v2991_v48, %v531_v1 }
  0xbe   : > { %v541_v3 = vpop.permute.xlu1 %540 }
  0xc1   : > { %v536_v5 = vpop.permute.xlu0 %535  ;;  %v380_v19 = vpop.permute.xlu2 %379 }
  0xc2   : > { %v603_v6 = vsel %vm601_vm2, %v600_v4, %v536_v5  ;;  %v647_v36 = vrot.slane %v380_v19, 4 }
  0xc3   : > { %v606_v7 = vsel %vm604_vm3, %v603_v6, %v541_v3 }
  0xc4   : > { %v609_v8 = vsel %vm607_vm4, %v606_v7, %v546_v0 }
  0xc5   : > { %v612_v11 = vsel %vm610_vm5, %v609_v8, %v551_v62 }
  0xc6   : > { %v566_v10 = vpop.permute.xlu1 %565  ;;  %v615_v48 = vsel %vm613_vm6, %v612_v11, %v556_v63 }
  0xc7   : > { %v621_v18 = vsel %vm597_vm1, %v3012_v20, %v566_v10 }
  0xc8   : > { %v623_v22 = vsel %vm601_vm2, %v621_v18, %v571_v2 }
  0xc9   : > { %v561_v12 = vpop.permute.xlu0 %560  ;;  %v376_v29 = vpop.permute.xlu2 %375 }
  0xca   : > { %v618_v13 = vsel %vm616_vm7, %v615_v48, %v561_v12  ;;  %v634_v53 = vrot.slane %v376_v29, 4 }
  0xcb   : > { %v787_v14 = vsel %vm786_vm8, %v618_v13, 0 }
  0xcc   : > { %798 = vmatpush.bf16.msra.mxu1 %v787_v14 }
  0xce   : > { %v581_v16 = vpop.permute.xlu1 %580 }
  0xcf   : > { %2342 = vmatmul.msk.bf16.vlgmr.msra.gmra.mxu1 %vm782_vm9, %v341_v15 }
  0xd1   : > { %v576_v21 = vpop.permute.xlu0 %575  ;;  %v384_v35 = vpop.permute.xlu2 %383 }
  0xd2   : > { %v625_v23 = vsel %vm604_vm3, %v623_v22, %v576_v21  ;;  %v661_v44 = vrot.slane %v384_v35, 4 }
  0xd3   : > { %v627_v24 = vsel %vm607_vm4, %v625_v23, %v581_v16 }
  0xd4   : > { %v629_v27 = vsel %vm610_vm5, %v627_v24, %v586_v9 }
  0xd6   : > { %v596_v25 = vpop.permute.xlu1 %595 }
  0xd9   : > { %v591_v28 = vpop.permute.xlu0 %590 }
  0xda   : > { %v631_v30 = vsel %vm613_vm6, %v629_v27, %v591_v28 }
  0xdb   : > { %v633_v31 = vsel %vm616_vm7, %v631_v30, %v596_v25 }
  0xdc   : > { %v789_v20 = vsel %vm786_vm8, %v633_v31, 0 }
  0xdd   : > { %811 = vmatpush.bf16.msrb.mxu1 %v789_v20 }
  0xde   : > { %v372_v32 = vpop.permute.xlu1 %371 }
  0xdf   : > { %v649_v38 = vrot.slane %v372_v32, 4  ;;  %v648_v42 = vsel %vm433_vm0, %v647_v36, %v372_v32 }
  0xe0   : > { %2343 = vmatmul.msk.bf16.vlgmr.msrb.gmra.mxu1 %vm782_vm9, %v341_v15  ;;  %v654_v50 = vperm.slane %v648_v42, %v2979_v17 }
  0xe1   : > { %v392_v33 = vpop.permute.xlu0 %391  ;;  %v650_v45 = vsel %vm433_vm0, %v380_v19, %v649_v38 }
  0xe2   : > { %v659_v34 = vrot.slane %v392_v33, 4  ;;  %v658_v54 = vperm.slane %v650_v45, %v2979_v17  ;;  %v662_v56 = vsel %vm433_vm0, %v392_v33, %v661_v44  ;;  %v683_v63 = vrot.slane %v654_v50, 4 }
  0xe3   : > { %v670_v3 = vperm.slane %v662_v56, %v2979_v17 }
  0xe4   : > { %v660_v37 = vsel %vm433_vm0, %v659_v34, %v384_v35  ;;  %v695_v2 = vrot.slane %v658_v54, 4 }
  0xe5   : > { %v666_v41 = vperm.slane %v660_v37, %v2979_v17  ;;  %v721_v16 = vrot.slane %v670_v3, 4 }
  0xe6   : > { %v396_v39 = vpop.permute.xlu1 %395 }
  0xe7   : > { %v671_v40 = vrot.slane %v396_v39, 4  ;;  %v709_v51 = vrot.slane %v666_v41, 4 }
  0xe9   : > { %v388_v43 = vpop.permute.xlu0 %387 }
  0xea   : > { %v672_v46 = vsel %vm433_vm0, %v671_v40, %v388_v43  ;;  %v673_v47 = vrot.slane %v388_v43, 4 }
  0xeb   : > { %v678_v49 = vperm.slane %v672_v46, %v2979_v17 }
  0xec   : > { %v674_v52 = vsel %vm433_vm0, %v396_v39, %v673_v47 }
  0xed   : > { %v707_v55 = vrot.slane %v678_v49, 4  ;;  %v682_v57 = vperm.slane %v674_v52, %v2979_v17  ;;  %v710_v58 = vsel %vm433_vm0, %v678_v49, %v709_v51 }
  0xee   : > { %v368_v59 = vpop.permute.xlu1 %367  ;;  %v718_v5 = vperm.slane %v710_v58, %v2982_v26 }
  0xef   : > { %v636_v60 = vsel %vm433_vm0, %v634_v53, %v368_v59  ;;  %v637_v61 = vrot.slane %v368_v59, 4  ;;  %v708_v62 = vsel %vm433_vm0, %v707_v55, %v666_v41  ;;  %v719_v6 = vrot.slane %v682_v57, 4 }
  0xf0   : > { %v642_v0 = vperm.slane %v636_v60, %v2979_v17  ;;  %v714_v1 = vperm.slane %v708_v62, %v2982_v26  ;;  %v735_v14 = vrot.slane %v718_v5, 4  ;;  %v722_v27 = vsel %vm433_vm0, %v682_v57, %v721_v16 }
  0xf1   : > { %v638_v4 = vsel %vm433_vm0, %v376_v29, %v637_v61  ;;  %v720_v19 = vsel %vm433_vm0, %v719_v6, %v670_v3  ;;  %v730_v20 = vperm.slane %v722_v27, %v2982_v26 }
  0xf2   : > { %v646_v7 = vperm.slane %v638_v4, %v2979_v17  ;;  %v684_v8 = vsel %vm433_vm0, %v683_v63, %v642_v0  ;;  %v685_v9 = vrot.slane %v642_v0, 4  ;;  %v731_v12 = vrot.slane %v714_v1, 4 }
  0xf3   : > { %v690_v10 = vperm.slane %v684_v8, %v2982_v26  ;;  %v726_v29 = vperm.slane %v720_v19, %v2982_v26  ;;  %v743_v36 = vrot.slane %v730_v20, 4 }
  0xf4   : > { %v686_v11 = vsel %vm433_vm0, %v654_v50, %v685_v9  ;;  %v696_v48 = vsel %vm433_vm0, %v695_v2, %v646_v7  ;;  %v697_v18 = vrot.slane %v646_v7, 4 }
  0xf5   : > { %v694_v13 = vperm.slane %v686_v11, %v2982_v26  ;;  %v733_v15 = vrot.slane %v690_v10, 4  ;;  %v732_v21 = vsel %vm433_vm0, %v731_v12, %v690_v10  ;;  %v702_v25 = vperm.slane %v696_v48, %v2982_v26 }
  0xf6   : > { %v698_v30 = vsel %vm433_vm0, %v658_v54, %v697_v18  ;;  %v739_v32 = vrot.slane %v726_v29, 4 }
  0xf7   : > { %v736_v22 = vsel %vm433_vm0, %v735_v14, %v694_v13  ;;  %v734_v23 = vsel %vm433_vm0, %v714_v1, %v733_v15  ;;  %v737_v24 = vrot.slane %v694_v13, 4  ;;  %v741_v31 = vrot.slane %v702_v25, 4  ;;  %v2426_v14 = vld [vmem:[%s3732_s4] sm:$0xff] }
  0xf8   : > { %752 = vrot.lane.b32.xlu0 %v736_v22, %s2817_s7  ;;  %748 = vrot.lane.b32.xlu2 %v734_v23, %s2813_s8  ;;  %v706_v33 = vperm.slane %v698_v30, %v2982_v26  ;;  %v740_v35 = vsel %vm433_vm0, %v739_v32, %v702_v25 }
  0xf9   : > { %v738_v28 = vsel %vm433_vm0, %v718_v5, %v737_v24  ;;  %v742_v34 = vsel %vm433_vm0, %v726_v29, %v741_v31  ;;  %2435 = vmatpush.bf16.msra.mxu2 %v2426_v14  ;;  %2436 = vmatpush.bf16.msra.mxu3 %v2426_v14 }
  0xfa   : > { %756 = vrot.lane.b32.xlu1 %v738_v28, %s2816_s11  ;;  %v744_v37 = vsel %vm433_vm0, %v743_v36, %v706_v33  ;;  %v745_v38 = vrot.slane %v706_v33, 4  ;;  %1500 = vmatpush.bf16.msra.mxu0 %v2426_v14 }
  0xfc   : > { %v746_v39 = vsel %vm433_vm0, %v730_v20, %v745_v38 }
 0x100   : > { %764 = vrot.lane.b32.xlu0 %v742_v34, %s3757_s10  ;;  %760 = vrot.lane.b32.xlu2 %v740_v35, %s3758_s29 }
 0x102   : > { %768 = vrot.lane.b32.xlu1 %v744_v37, %s3759_s26 }
 0x108   : > { %772 = vrot.lane.b32.xlu2 %v746_v39, %s3760_s9 }
 0x14c   : > { %v800_v40 = vpop.f32.mrf.mxu1 }
 0x152   : > { %v749_v43 = vpop.permute.xlu2 %748 }
 0x153   : > { %v775_v46 = vsel %vm597_vm1, %v732_v21, %v749_v43 }
 0x154   : > { %v802_v41 = vpop.f32.mrf.mxu1 }
 0x15a   : > { %v761_v47 = vpop.permute.xlu2 %760 }
 0x15d   : > { %v813_v42 = vpop.f32.mrf.mxu1 }
 0x162   : > { %v773_v56 = vpop.permute.xlu2 %772 }
 0x165   : > { %v815_v44 = vpop.f32.mrf.mxu1 }
 0x16a   : > { %v753_v45 = vpop.permute.xlu0 %752 }
 0x16b   : > { %v776_v49 = vsel %vm601_vm2, %v775_v46, %v753_v45 }
 0x16c   : > { %v757_v50 = vpop.permute.xlu1 %756 }
 0x16d   : > { %v777_v51 = vsel %vm604_vm3, %v776_v49, %v757_v50 }
 0x16e   : > { %v778_v53 = vsel %vm607_vm4, %v777_v51, %v761_v47 }
 0x172   : > { %v765_v52 = vpop.permute.xlu0 %764 }
 0x173   : > { %v779_v54 = vsel %vm610_vm5, %v778_v53, %v765_v52 }
 0x174   : > { %v769_v55 = vpop.permute.xlu1 %768 }
 0x175   : > { %v780_v57 = vsel %vm613_vm6, %v779_v54, %v769_v55 }
 0x176   : > { %v781_v58 = vsel %vm616_vm7, %v780_v57, %v773_v56 }
 0x177   : > { %v801_v59 = vadd.f32 %v800_v40, %v781_v58  ;;  %v3142_v60 = vadd.f32 %v813_v42, %v781_v58 }
 0x179   : > { %824 = vrot.lane.b32.xlu2 %v801_v59, %s3757_s10  ;;  %833 = vrot.lane.b32.xlu1 %v801_v59, %s2817_s7  ;;  %v863_v3 = vrot.slane %v801_v59, 4  ;;  %v975_v47 = vrot.slane %v3142_v60, 4 }
 0x17a   : > { %818 = vrot.lane.b32.xlu0 %v801_v59, %s3760_s9 }
 0x181   : > { %836 = vrot.lane.b32.xlu2 %v801_v59, %s2813_s8  ;;  %821 = vrot.lane.b32.xlu1 %v801_v59, %s3759_s26 }
 0x182   : > { %827 = vrot.lane.b32.xlu0 %v801_v59, %s3758_s29 }
 0x189   : > { %840 = vrot.lane.b32.xlu2 %v3142_v60, %s3760_s9  ;;  %830 = vrot.lane.b32.xlu1 %v801_v59, %s2816_s11 }
 0x18a   : > { %855 = vrot.lane.b32.xlu0 %v3142_v60, %s2817_s7 }
 0x191   : > { %849 = vrot.lane.b32.xlu2 %v3142_v60, %s3758_s29  ;;  %846 = vrot.lane.b32.xlu1 %v3142_v60, %s3757_s10 }
 0x192   : > { %843 = vrot.lane.b32.xlu0 %v3142_v60, %s3759_s26 }
 0x199   : > { %858 = vrot.lane.b32.xlu1 %v3142_v60, %s2813_s8 }
 0x19a   : > { %852 = vrot.lane.b32.xlu0 %v3142_v60, %s2816_s11 }
 0x1d3   : > { %v825_v61 = vpop.permute.xlu2 %824 }
 0x1d4   : > { %v873_v5 = vrot.slane %v825_v61, 4 }
 0x1db   : > { %v837_v62 = vpop.permute.xlu2 %836 }
 0x1dc   : > { %v897_v24 = vrot.slane %v837_v62, 4 }
 0x1e3   : > { %v3160_v6 = vpop.permute.xlu2 %840 }
 0x1e4   : > { %v987_v44 = vrot.slane %v3160_v6, 4 }
 0x1eb   : > { %v834_v63 = vpop.permute.xlu1 %833  ;;  %v850_v35 = vpop.permute.xlu2 %849 }
 0x1ec   : > { %v819_v0 = vpop.permute.xlu0 %818  ;;  %v885_v7 = vrot.slane %v834_v63, 4  ;;  %v999_v49 = vrot.slane %v850_v35, 4 }
 0x1ed   : > { %v875_v1 = vrot.slane %v819_v0, 4  ;;  %v874_v12 = vsel %vm433_vm0, %v873_v5, %v819_v0 }
 0x1ee   : > { %v880_v19 = vperm.slane %v874_v12, %v2979_v17 }
 0x1ef   : > { %v876_v2 = vsel %vm433_vm0, %v825_v61, %v875_v1 }
 0x1f0   : > { %v3164_v11 = vperm.slane %v876_v2, %v2979_v17  ;;  %v909_v32 = vrot.slane %v880_v19, 4 }
 0x1f2   : > { %v921_v21 = vrot.slane %v3164_v11, 4 }
 0x1f3   : > { %v822_v4 = vpop.permute.xlu1 %821 }
 0x1f4   : > { %v861_v8 = vrot.slane %v822_v4, 4  ;;  %v864_v9 = vsel %vm433_vm0, %v822_v4, %v863_v3  ;;  %v828_v10 = vpop.permute.xlu0 %827 }
 0x1f5   : > { %v886_v13 = vsel %vm433_vm0, %v885_v7, %v828_v10  ;;  %v3174_v16 = vperm.slane %v864_v9, %v2979_v17  ;;  %v887_v18 = vrot.slane %v828_v10, 4 }
 0x1f6   : > { %v862_v48 = vsel %vm433_vm0, %v861_v8, %v801_v59  ;;  %v892_v23 = vperm.slane %v886_v13, %v2979_v17 }
 0x1f7   : > { %v868_v15 = vperm.slane %v862_v48, %v2979_v17  ;;  %v922_v25 = vsel %vm433_vm0, %v921_v21, %v3174_v16  ;;  %v888_v27 = vsel %vm433_vm0, %v834_v63, %v887_v18  ;;  %v923_v50 = vrot.slane %v3174_v16, 4 }
 0x1f8   : > { %v935_v33 = vrot.slane %v892_v23, 4  ;;  %v3186_v36 = vperm.slane %v922_v25, %v2982_v26  ;;  %v896_v37 = vperm.slane %v888_v27, %v2979_v17 }
 0x1f9   : > { %v911_v22 = vrot.slane %v868_v15, 4  ;;  %v910_v45 = vsel %vm433_vm0, %v909_v32, %v868_v15 }
 0x1fa   : > { %v967_v53 = vrot.slane %v3186_v36, 4  ;;  %v947_v54 = vrot.slane %v896_v37, 4  ;;  %v3206_v61 = vperm.slane %v910_v45, %v2982_v26 }
 0x1fb   : > { %v831_v28 = vpop.permute.xlu1 %830  ;;  %v912_v29 = vsel %vm433_vm0, %v880_v19, %v911_v22 }
 0x1fc   : > { %v898_v30 = vsel %vm433_vm0, %v897_v24, %v831_v28  ;;  %v899_v31 = vrot.slane %v831_v28, 4  ;;  %v856_v20 = vpop.permute.xlu0 %855  ;;  %v920_v39 = vperm.slane %v912_v29, %v2982_v26 }
 0x1fd   : > { %v904_v34 = vperm.slane %v898_v30, %v2979_v17  ;;  %v997_v43 = vrot.slane %v856_v20, 4  ;;  %v1000_v21 = vsel %vm433_vm0, %v856_v20, %v999_v49 }
 0x1fe   : > { %v900_v38 = vsel %vm433_vm0, %v837_v62, %v899_v31  ;;  %v963_v62 = vrot.slane %v920_v39, 4  ;;  %v1008_v31 = vperm.slane %v1000_v21, %v2979_v17 }
 0x1ff   : > { %v908_v40 = vperm.slane %v900_v38, %v2979_v17  ;;  %v933_v41 = vrot.slane %v904_v34, 4  ;;  %v936_v42 = vsel %vm433_vm0, %v904_v34, %v935_v33  ;;  %v998_v57 = vsel %vm433_vm0, %v997_v43, %v850_v35 }
 0x200   : > { %v944_v46 = vperm.slane %v936_v42, %v2982_v26  ;;  %v1004_v22 = vperm.slane %v998_v57, %v2979_v17  ;;  %v1059_v49 = vrot.slane %v1008_v31, 4 }
 0x201   : > { %v934_v51 = vsel %vm433_vm0, %v933_v41, %v892_v23  ;;  %v945_v52 = vrot.slane %v908_v40, 4  ;;  %v948_v13 = vsel %vm433_vm0, %v908_v40, %v947_v54 }
 0x202   : > { %v3201_v55 = vperm.slane %v934_v51, %v2982_v26  ;;  %v961_v56 = vrot.slane %v944_v46, 4  ;;  %v3242_v25 = vsel %vm433_vm0, %v944_v46, %v963_v62  ;;  %v3245_v27 = vperm.slane %v948_v13, %v2982_v26 }
 0x203   : > { %v847_v58 = vpop.permute.xlu1 %846  ;;  %v946_v59 = vsel %vm433_vm0, %v945_v52, %v896_v37  ;;  %v1047_v35 = vrot.slane %v1004_v22, 4  ;;  %v2350_v38 = vmul.f32 -1.442695, %v3242_v25 }
 0x204   : > { %v957_v63 = vrot.slane %v3201_v55, 4  ;;  %v985_v0 = vrot.slane %v847_v58, 4  ;;  %v988_v1 = vsel %vm433_vm0, %v847_v58, %v987_v44  ;;  %v844_v2 = vpop.permute.xlu0 %843  ;;  %v3211_v3 = vsel %vm433_vm0, %v961_v56, %v920_v39 }
 0x205   : > { %v996_v4 = vperm.slane %v988_v1, %v2979_v17  ;;  %v973_v5 = vrot.slane %v844_v2, 4  ;;  %v976_v7 = vsel %vm433_vm0, %v844_v2, %v975_v47  ;;  %v2348_v8 = vmul.f32 -1.442695, %v3211_v3 }
 0x206   : > { %v986_v9 = vsel %vm433_vm0, %v985_v0, %v3160_v6  ;;  %v984_v10 = vperm.slane %v976_v7, %v2979_v17  ;;  %v3220_v12 = vperm.slane %v946_v59, %v2982_v26  ;;  %v3224_v48 = vsel %vm433_vm0, %v957_v63, %v3206_v61 }
 0x207   : > { %v1033_v14 = vrot.slane %v996_v4, 4  ;;  %v974_v15 = vsel %vm433_vm0, %v973_v5, %v3142_v60  ;;  %2570 = vpow2.f32 %v2348_v8  ;;  %v992_v16 = vperm.slane %v986_v9, %v2979_v17 }
 0x208   : > { %v980_v6 = vperm.slane %v974_v15, %v2979_v17  ;;  %v3233_v18 = vsel %vm433_vm0, %v3220_v12, %v967_v53  ;;  %v2344_v19 = vmul.f32 -1.442695, %v3224_v48  ;;  %v924_v60 = vsel %vm433_vm0, %v3164_v11, %v923_v50 }
 0x209   : > { %v2354_v23 = vmul.f32 -1.442695, %v3233_v18  ;;  %v1035_v24 = vrot.slane %v984_v10, 4  ;;  %v1034_v29 = vsel %vm433_vm0, %v1033_v14, %v984_v10  ;;  %v1021_v20 = vrot.slane %v992_v16, 4 }
 0x20a   : > { %2572 = vpow2.f32 %v2344_v19  ;;  %v1023_v28 = vrot.slane %v980_v6, 4  ;;  %v3250_v11 = vperm.slane %v924_v60, %v2982_v26  ;;  %v3255_v40 = vperm.slane %v1034_v29, %v2982_v26 }
 0x20b   : > { %v859_v30 = vpop.permute.xlu1 %858  ;;  %2574 = vpow2.f32 %v2354_v23  ;;  %v1036_v39 = vsel %vm433_vm0, %v996_v4, %v1035_v24  ;;  %v969_v46 = vrot.slane %v3245_v27, 4  ;;  %v1022_v50 = vsel %vm433_vm0, %v1021_v20, %v980_v6 }
 0x20c   : > { %v1009_v32 = vrot.slane %v859_v30, 4  ;;  %v853_v33 = vpop.permute.xlu0 %852  ;;  %v1024_v45 = vsel %vm433_vm0, %v992_v16, %v1023_v28  ;;  %v3271_v57 = vperm.slane %v1036_v39, %v2982_v26  ;;  %v1079_v63 = vrot.slane %v3255_v40, 4 }
 0x20d   : > { %v2571_v34 = vpop.eup %2570  ;;  %v1011_v37 = vrot.slane %v853_v33, 4  ;;  %v1032_v62 = vperm.slane %v1024_v45, %v2982_v26  ;;  %v3281_v1 = vsel %vm433_vm0, %v969_v46, %v3250_v11  ;;  %v3293_v8 = vperm.slane %v1022_v50, %v2982_v26 }
 0x20e   : > { %v1010_v41 = vsel %vm433_vm0, %v1009_v32, %v853_v33  ;;  %v3258_v42 = vadd.f32 1.0, %v2571_v34  ;;  %v959_v9 = vrot.slane %v3206_v61, 4  ;;  %v3308_v23 = vmul.f32 -1.442695, %v3281_v1 }
 0x20f   : > { %v1012_v43 = vsel %vm433_vm0, %v859_v30, %v1011_v37  ;;  %v1016_v44 = vperm.slane %v1010_v41, %v2979_v17  ;;  %v1075_v16 = vrot.slane %v1032_v62, 4 }
 0x210   : > { %v2573_v47 = vpop.eup %2572  ;;  %v1020_v51 = vperm.slane %v1012_v43, %v2979_v17  ;;  %2576 = vrcp.f32 %v3258_v42  ;;  %v1218_v15 = vand.u32 2147483647, %v3258_v42  ;;  %v1220_v24 = vand.u32 2147483648, %v3258_v42 }
 0x211   : > { %v2575_v52 = vpop.eup %2574  ;;  %v1045_v53 = vrot.slane %v1016_v44, 4  ;;  %v1048_v54 = vsel %vm433_vm0, %v1016_v44, %v1047_v35  ;;  %v3268_v56 = vadd.f32 1.0, %v2573_v47  ;;  %2578 = vpow2.f32 %v2350_v38 }
 0x212   : > { %v1056_v58 = vperm.slane %v1048_v54, %v2982_v26  ;;  %v1057_v59 = vrot.slane %v1020_v51, 4  ;;  %v3277_v0 = vadd.f32 1.0, %v2575_v52  ;;  %v1060_v60 = vsel %vm433_vm0, %v1020_v51, %v1059_v49 }
 0x213   : > { %v1046_v17 = vsel %vm433_vm0, %v1045_v53, %v1004_v22  ;;  %2580 = vrcp.f32 %v3268_v56  ;;  %vm1214_vm10 = vweird.f32 %v3258_v42  ;;  %vm3321_vm11 = vcmp.eq.f32.partialorder %v1218_v15, 8.507059e+37 }
 0x214   : > { %v3284_v2 = vperm.slane %v1046_v17, %v2982_v26  ;;  %v1058_v4 = vsel %vm433_vm0, %v1057_v59, %v1008_v31  ;;  %v1073_v5 = vrot.slane %v1056_v58, 4  ;;  %2582 = vrcp.f32 %v3277_v0 }
 0x215   : > { %v3289_v7 = vperm.slane %v1058_v4, %v2982_v26  ;;  %v3326_v33 = vsel %vm433_vm0, %v1056_v58, %v1075_v16  ;;  %v3331_v37 = vperm.slane %v1060_v60, %v2982_v26  ;;  %v1221_v41 = vor.u32 1.1754944e-38, %v1220_v24 }
 0x216   : > { %v2577_v10 = vpop.eup %2576  ;;  %v1069_v13 = vrot.slane %v3284_v2, 4  ;;  %v3298_v14 = vsel %vm433_vm0, %v1073_v5, %v1032_v62  ;;  %vm1304_vm13 = vweird.f32 %v3277_v0  ;;  %v1308_v45 = vand.u32 2147483647, %v3277_v0 }
 0x217   : > { %v2579_v6 = vpop.eup %2578  ;;  %v2349_v19 = vmul.f32 -1.442695, %v3298_v14  ;;  %v1210_v21 = vmul.f32 %v2577_v10, %v3258_v42  ;;  %v3305_v22 = vsel %vm433_vm0, %v3289_v7, %v1079_v63  ;;  %vm1215_vm12 = vweird.f32 %v2577_v10 }
 0x218   : > { %v2355_v28 = vmul.f32 -1.442695, %v3305_v22  ;;  %v3315_v29 = vsel %vm433_vm0, %v1069_v13, %v3293_v8  ;;  %v3328_v34 = vadd.f32 1.0, %v2579_v6  ;;  %v2351_v47 = vmul.f32 -1.442695, %v3326_v33  ;;  %vm1216_vm14 = vmor %vm1214_vm10, %vm1215_vm12 }
 0x219   : > { %2584 = vpow2.f32 %v2349_v19  ;;  %v1211_v30 = vsub.f32 1.0, %v1210_v21  ;;  %v2345_v31 = vmul.f32 -1.442695, %v3315_v29  ;;  %v3319_v20 = vpop.eup %2580  ;;  %v1310_v49 = vand.u32 2147483648, %v3277_v0 }
 0x21a   : > { %2586 = vpow2.f32 %v2355_v28  ;;  %v2583_v35 = vpop.eup %2582  ;;  %v1150_v39 = vmul.f32 %v3319_v20, %v3268_v56  ;;  %v1158_v50 = vand.u32 2147483647, %v3268_v56  ;;  %v1160_v54 = vand.u32 2147483648, %v3268_v56 }
 0x21b   : > { %v1212_v38 = vmul.f32 %v2577_v10, %v1211_v30  ;;  %v1300_v43 = vmul.f32 %v2583_v35, %v3277_v0  ;;  %2588 = vpow2.f32 %v2345_v31  ;;  %vm1155_vm15 = vweird.f32 %v3319_v20 }
 0x21c   : > { %v1151_v46 = vsub.f32 1.0, %v1150_v39  ;;  %2590 = vrcp.f32 %v3328_v34  ;;  %vm1305_vm2 = vweird.f32 %v2583_v35  ;;  %vm3356_vm3 = vcmp.eq.f32.partialorder %v1308_v45, 8.507059e+37 }
 0x21d   : > { %v1213_v44 = vadd.f32 %v2577_v10, %v1212_v38  ;;  %v1301_v26 = vsub.f32 1.0, %v1300_v43  ;;  %2592 = vpow2.f32 %v2351_v47  ;;  %vm1154_vm4 = vweird.f32 %v3268_v56  ;;  %vm1306_vm7 = vmor %vm1304_vm13, %vm1305_vm2 }
 0x21e   : > { %v1152_v53 = vmul.f32 %v3319_v20, %v1151_v46  ;;  %v1250_v13 = vand.u32 2147483648, %v3328_v34  ;;  %v1311_v16 = vor.u32 1.1754944e-38, %v1310_v49  ;;  %vm3363_vm5 = vmor %vm1154_vm4, %vm1155_vm15  ;;  %vm3367_vm6 = vcmp.eq.f32.partialorder %v1158_v50, 8.507059e+37 }
 0x21f   : > { %v2585_v51 = vpop.eup %2584  ;;  %v1217_v52 = vsel %vm1216_vm14, %v2577_v10, %v1213_v44  ;;  %v1302_v62 = vmul.f32 %v2583_v35, %v1301_v26  ;;  %v1161_v60 = vor.u32 1.1754944e-38, %v1160_v54  ;;  %v1248_v24 = vand.u32 2147483647, %v3328_v34 }
 0x220   : > { %v2587_v58 = vpop.eup %2586  ;;  %v3346_v59 = vadd.f32 1.0, %v2585_v51  ;;  %v1222_v42 = vsel %vm3321_vm11, %v1221_v41, %v1217_v52  ;;  %v1153_v4 = vadd.f32 %v3319_v20, %v1152_v53  ;;  %v3387_v43 = vor.u32 1.1754944e-38, %v1250_v13 }
 0x221   : > { %v1393_v63 = vmul.f32 %v1222_v42, %v3211_v3  ;;  %v3352_v17 = vadd.f32 1.0, %v2587_v58  ;;  %v2589_v5 = vpop.eup %2588  ;;  %v1303_v15 = vadd.f32 %v2583_v35, %v1302_v62  ;;  %v1081_v0 = vrot.slane %v3331_v37, 4 }
 0x222   : > { %2594 = vrcp.f32 %v3346_v59  ;;  %v3371_v19 = vpop.eup %2590  ;;  %v1233_v21 = vand.u32 2147483647, %v3346_v59  ;;  %v1235_v56 = vand.u32 2147483648, %v3346_v59  ;;  %v3379_v32 = vadd.f32 1.0, %v2589_v5 }
 0x223   : > { %2596 = vrcp.f32 %v3352_v17  ;;  %v2593_v28 = vpop.eup %2592  ;;  %v1409_v30 = vpack.c.bf16 %v1393_v63, %v1393_v63  ;;  %v1307_v31 = vsel %vm1306_vm7, %v2583_v35, %v1303_v15  ;;  %v1157_v38 = vsel %vm3363_vm5, %v3319_v20, %v1153_v4 }
 0x224   : > { %v1312_v39 = vsel %vm3356_vm3, %v1311_v16, %v1307_v31  ;;  %v1323_v41 = vand.u32 2147483647, %v3352_v17  ;;  %v1325_v44 = vand.u32 2147483648, %v3352_v17  ;;  %v1162_v35 = vsel %vm3367_vm6, %v1161_v60, %v1157_v38 }
 0x225   : > { %v1399_v45 = vmul.f32 %v1312_v39, %v3233_v18  ;;  %2598 = vrcp.f32 %v3379_v32  ;;  %vm1244_vm8 = vweird.f32 %v3328_v34  ;;  %vm1229_vm9 = vweird.f32 %v3346_v59 }
 0x226   : > { %vm1319_vm10 = vweird.f32 %v3352_v17  ;;  %v3398_v46 = vadd.f32 1.0, %v2593_v28  ;;  %v1240_v47 = vmul.f32 %v3371_v19, %v3328_v34  ;;  %vm3403_vm11 = vcmp.eq.f32.partialorder %v1233_v21, 8.507059e+37 }
 0x227   : > { %v1236_v50 = vor.u32 1.1754944e-38, %v1235_v56  ;;  %v3407_v51 = vunpack.c.l.b16 %v1409_v30  ;;  %v1175_v52 = vand.u32 2147483648, %v3379_v32  ;;  %vm3411_vm12 = vcmp.eq.f32.partialorder %v1323_v41, 8.507059e+37 }
 0x228   : > { %v2595_v20 = vpop.eup %2594  ;;  %v1173_v58 = vand.u32 2147483647, %v3379_v32  ;;  %v3417_v42 = vmul.f32 %v1162_v35, %v3224_v48  ;;  %v1326_v63 = vor.u32 1.1754944e-38, %v1325_v44  ;;  %v1415_v4 = vpack.c.bf16 %v1399_v45, %v1399_v45 }
 0x229   : > { %v2597_v26 = vpop.eup %2596  ;;  %v1225_v18 = vmul.f32 %v2595_v20, %v3346_v59  ;;  %v1241_v5 = vsub.f32 1.0, %v1240_v47  ;;  %vm3419_vm13 = vcmp.eq.f32.partialorder %v1248_v24, 8.507059e+37  ;;  %vm1230_vm14 = vweird.f32 %v2595_v20 }
 0x22a   : > { %v1315_v53 = vmul.f32 %v2597_v26, %v3352_v17  ;;  %vm1320_vm15 = vweird.f32 %v2597_v26  ;;  %vm1169_vm2 = vweird.f32 %v3379_v32  ;;  %2600 = vrcp.f32 %v3398_v46  ;;  %vm3441_vm5 = vmor %vm1229_vm9, %vm1230_vm14 }
 0x22b   : > { %v1226_v62 = vsub.f32 1.0, %v1225_v18  ;;  %v2599_v15 = vpop.eup %2598  ;;  %v1176_v3 = vor.u32 1.1754944e-38, %v1175_v52  ;;  %v1242_v48 = vmul.f32 %v3371_v19, %v1241_v5  ;;  %vm1245_vm3 = vweird.f32 %v3371_v19  ;;  %vm1321_vm7 = vmor %vm1319_vm10, %vm1320_vm15 }
 0x22c   : > { %v1316_v13 = vsub.f32 1.0, %v1315_v53  ;;  %v1165_v21 = vmul.f32 %v2599_v15, %v3379_v32  ;;  %vm3428_vm4 = vcmp.eq.f32.partialorder %v1173_v58, 8.507059e+37  ;;  %v1405_v60 = vpack.c.bf16 %v3417_v42, %v3417_v42  ;;  %vm3449_vm6 = vmor %vm1244_vm8, %vm1245_vm3 }
 0x22d   : > { %v1227_v16 = vmul.f32 %v2595_v20, %v1226_v62  ;;  %v3436_v24 = vsel %vm433_vm0, %v1081_v0, %v3271_v57  ;;  %v1449_v31 = vunpack.c.l.b16 %v1415_v4  ;;  %v1243_v38 = vadd.f32 %v3371_v19, %v1242_v48 }
 0x22e   : > { %v1317_v6 = vmul.f32 %v2597_v26, %v1316_v13  ;;  %v1263_v39 = vand.u32 2147483647, %v3398_v46  ;;  %v1166_v44 = vsub.f32 1.0, %v1165_v21  ;;  %2602 = vpow2.f32 %v3308_v23 }
 0x22f   : > { %v1228_v28 = vadd.f32 %v2595_v20, %v1227_v16  ;;  %v2357_v59 = vmul.f32 -1.442695, %v3436_v24  ;;  %vm1170_vm9 = vweird.f32 %v2599_v15  ;;  %v1247_v34 = vsel %vm3449_vm6, %v3371_v19, %v1243_v38 }
 0x230   : > { %v1318_v41 = vadd.f32 %v2597_v26, %v1317_v6  ;;  %v1265_v35 = vand.u32 2147483648, %v3398_v46  ;;  %v2601_v47 = vpop.eup %2600  ;;  %v1167_v52 = vmul.f32 %v2599_v15, %v1166_v44  ;;  %v1071_v58 = vrot.slane %v3293_v8, 4  ;;  %vm1171_vm8 = vmor %vm1169_vm2, %vm1170_vm9 }
 0x231   : > { %v1232_v45 = vsel %vm3441_vm5, %v2595_v20, %v1228_v28  ;;  %v3470_v20 = vsel %vm433_vm0, %v3201_v55, %v959_v9  ;;  %v1255_v19 = vmul.f32 %v2601_v47, %v3398_v46  ;;  %v1252_v61 = vsel %vm3419_vm13, %v3387_v43, %v1247_v34 }
 0x232   : > { %v1237_v23 = vsel %vm3403_vm11, %v1236_v50, %v1232_v45  ;;  %v1322_v18 = vsel %vm1321_vm7, %v2597_v26, %v1318_v41  ;;  %v1168_v50 = vadd.f32 %v2599_v15, %v1167_v52  ;;  %2604 = vpow2.f32 %v2357_v59 }
 0x233   : > { %v1394_v17 = vmul.f32 %v1237_v23, %v3298_v14  ;;  %v1327_v53 = vsel %vm3411_vm12, %v1326_v63, %v1322_v18  ;;  %v1256_v55 = vsub.f32 1.0, %v1255_v19  ;;  %v3486_v9 = vsel %vm433_vm0, %v3284_v2, %v1071_v58 }
 0x234   : > { %v1400_v49 = vmul.f32 %v1327_v53, %v3305_v22  ;;  %v2346_v8 = vmul.f32 -1.442695, %v3470_v20  ;;  %v2603_v14 = vpop.eup %2602  ;;  %v1172_v54 = vsel %vm1171_vm8, %v2599_v15, %v1168_v50  ;;  %vm1260_vm10 = vweird.f32 %v2601_v47 }
 0x235   : > { %v1410_v26 = vpack.c.bf16 %v1394_v17, %v1394_v17  ;;  %v2347_v62 = vmul.f32 -1.442695, %v3486_v9  ;;  %v1177_v63 = vsel %vm3428_vm4, %v1176_v3, %v1172_v54  ;;  %v1257_v4 = vmul.f32 %v2601_v47, %v1256_v55 }
 0x236   : > { %v1416_v22 = vpack.c.bf16 %v1400_v49, %v1400_v49  ;;  %v3492_v32 = vadd.f32 1.0, %v2603_v14  ;;  %v1390_v10 = vmul.f32 %v1177_v63, %v3315_v29  ;;  %vm1259_vm11 = vweird.f32 %v3398_v46 }
 0x237   : > { %v1444_v43 = vunpack.c.l.b16 %v1410_v26  ;;  %2606 = vpow2.f32 %v2346_v8  ;;  %v1258_v13 = vadd.f32 %v2601_v47, %v1257_v4  ;;  %v1395_v15 = vmul.f32 %v1252_v61, %v3242_v25  ;;  %vm1261_vm12 = vmor %vm1259_vm11, %vm1260_vm10 }
 0x238   : > { %v1450_v5 = vunpack.c.l.b16 %v1416_v22  ;;  %2608 = vrcp.f32 %v3492_v32  ;;  %v2605_v16 = vpop.eup %2604  ;;  %v1406_v6 = vpack.c.bf16 %v1390_v10, %v1390_v10  ;;  %vm1264_vm13 = vcmp.eq.f32.partialorder %v1263_v39, 8.507059e+37 }
 0x239   : > { %v1457_v2 = vpack.c.b16 %v1444_v43, %v3407_v51  ;;  %v1266_v3 = vor.u32 1.1754944e-38, %v1265_v35  ;;  %v1262_v29 = vsel %vm1261_vm12, %v2601_v47, %v1258_v13  ;;  %v3501_v21 = vadd.f32 1.0, %v2605_v16 }
 0x23a   : > { %v1460_v48 = vpack.c.b16 %v1450_v5, %v1449_v31  ;;  %2610 = vpow2.f32 %v2347_v62  ;;  %v965_v46 = vrot.slane %v3220_v12, 4  ;;  %v1439_v25 = vunpack.c.l.b16 %v1405_v60 }
 0x23b   : > { %2366 = vmatmul.msk.bf16.vlgmr.msra.gmra.mxu2 %vm597_vm1, %v1457_v2  ;;  %v1440_v51 = vunpack.c.l.b16 %v1406_v6  ;;  %v1267_v56 = vsel %vm1264_vm13, %v1266_v3, %v1262_v29  ;;  %v1411_v30 = vpack.c.bf16 %v1395_v15, %v1395_v15  ;;  %2612 = vrcp.f32 %v3501_v21 }
 0x23c   : > { %2369 = vmatmul.msk.bf16.vlgmr.msra.gmra.mxu3 %vm597_vm1, %v1460_v48  ;;  %v1396_v28 = vmul.f32 %v1267_v56, %v3326_v33  ;;  %v3512_v39 = vsel %vm433_vm0, %v965_v46, %v3186_v36  ;;  %v1077_v12 = vrot.slane %v3289_v7, 4  ;;  %v1338_v44 = vand.u32 2147483647, %v3492_v32 }
 0x23d   : > { %v2607_v31 = vpop.eup %2606  ;;  %v1455_v38 = vpack.c.b16 %v1440_v51, %v1439_v25  ;;  %v1340_v42 = vand.u32 2147483648, %v3492_v32  ;;  %v2352_v33 = vmul.f32 -1.442695, %v3512_v39  ;;  %v971_v0 = vrot.slane %v3250_v11, 4 }
 0x23e   : > { %v2609_v41 = vpop.eup %2608  ;;  %v3517_v60 = vadd.f32 1.0, %v2607_v31  ;;  %v3525_v36 = vsel %vm433_vm0, %v1077_v12, %v3255_v40  ;;  %v1083_v45 = vrot.slane %v3271_v57, 4  ;;  %v1412_v34 = vpack.c.bf16 %v1396_v28, %v1396_v28 }
 0x23f   : > { %2364 = vmatmul.msk.bf16.vlgmr.msra.gmra.mxu0 %vm597_vm1, %v1455_v38  ;;  %v1330_v59 = vmul.f32 %v2609_v41, %v3492_v32  ;;  %v1445_v35 = vunpack.c.l.b16 %v1411_v30  ;;  %vm1334_vm14 = vweird.f32 %v3492_v32  ;;  %vm3532_vm15 = vcmp.eq.f32.partialorder %v1338_v44, 8.507059e+37 }
 0x240   : > { %v2611_v7 = vpop.eup %2610  ;;  %2614 = vrcp.f32 %v3517_v60  ;;  %v1341_v40 = vor.u32 1.1754944e-38, %v1340_v42  ;;  %vm1349_vm2 = vweird.f32 %v3501_v21  ;;  %v2353_v57 = vmul.f32 -1.442695, %v3525_v36 }
 0x241   : > { %v1331_v47 = vsub.f32 1.0, %v1330_v59  ;;  %v3530_v23 = vadd.f32 1.0, %v2611_v7  ;;  %2616 = vpow2.f32 %v2352_v33  ;;  %v2613_v11 = vpop.eup %2612  ;;  %vm1335_vm3 = vweird.f32 %v2609_v41 }
 0x242   : > { %v1345_v17 = vmul.f32 %v2613_v11, %v3501_v21  ;;  %v3541_v53 = vsel %vm433_vm0, %v3245_v27, %v971_v0  ;;  %v1446_v19 = vunpack.c.l.b16 %v1412_v34  ;;  %v1353_v58 = vand.u32 2147483647, %v3501_v21  ;;  %vm1336_vm4 = vmor %vm1334_vm14, %vm1335_vm3 }
 0x243   : > { %v1332_v52 = vmul.f32 %v2609_v41, %v1331_v47  ;;  %v1188_v49 = vand.u32 2147483647, %v3517_v60  ;;  %2618 = vrcp.f32 %v3530_v23  ;;  %v3548_v26 = vsel %vm433_vm0, %v3331_v37, %v1083_v45 }
 0x244   : > { %v1346_v61 = vsub.f32 1.0, %v1345_v17  ;;  %2620 = vpow2.f32 %v2353_v57  ;;  %v1355_v27 = vand.u32 2147483648, %v3501_v21  ;;  %v1190_v8 = vand.u32 2147483648, %v3517_v60 }
 0x245   : > { %v1333_v50 = vadd.f32 %v2609_v41, %v1332_v52  ;;  %v2358_v14 = vmul.f32 -1.442695, %v3541_v53  ;;  %v2359_v22 = vmul.f32 -1.442695, %v3548_v26  ;;  %vm1350_vm5 = vweird.f32 %v2613_v11 }
 0x246   : > { %v2615_v55 = vpop.eup %2614  ;;  %v1347_v43 = vmul.f32 %v2613_v11, %v1346_v61  ;;  %v1458_v37 = vpack.c.b16 %v1446_v19, %v1445_v35  ;;  %vm1351_vm0 = vmor %vm1349_vm2, %vm1350_vm5  ;;  %vm1354_vm6 = vcmp.eq.f32.partialorder %v1353_v58, 8.507059e+37  ;;  %v1356_v15 = vor.u32 1.1754944e-38, %v1355_v27 }
 0x247   : > { %v2617_v54 = vpop.eup %2616  ;;  %v1337_v62 = vsel %vm1336_vm4, %v2609_v41, %v1333_v50  ;;  %v1180_v63 = vmul.f32 %v2615_v55, %v3517_v60  ;;  %2622 = vpow2.f32 %v2358_v14  ;;  %vm1184_vm7 = vweird.f32 %v3517_v60 }
 0x248   : > { %v1342_v4 = vsel %vm3532_vm15, %v1341_v40, %v1337_v62  ;;  %v3559_v32 = vadd.f32 1.0, %v2617_v54  ;;  %v1348_v5 = vadd.f32 %v2613_v11, %v1347_v43  ;;  %2624 = vpow2.f32 %v2359_v22 }
 0x249   : > { %v1401_v10 = vmul.f32 %v1342_v4, %v3281_v1  ;;  %v1181_v2 = vsub.f32 1.0, %v1180_v63  ;;  %v2619_v13 = vpop.eup %2618  ;;  %vm1185_vm9 = vweird.f32 %v2615_v55  ;;  %vm3568_vm8 = vcmp.eq.f32.partialorder %v1188_v49, 8.507059e+37 }
 0x24a   : > { %2626 = vrcp.f32 %v3559_v32  ;;  %v2621_v16 = vpop.eup %2620  ;;  %v1352_v48 = vsel %vm1351_vm0, %v2613_v11, %v1348_v5  ;;  %v1195_v1 = vmul.f32 %v2619_v13, %v3530_v23  ;;  %v1191_v56 = vor.u32 1.1754944e-38, %v1190_v8  ;;  %vm1186_vm10 = vmor %vm1184_vm7, %vm1185_vm9 }
 0x24b   : > { %2367 = vmatmul.msk.bf16.gmra.mxu2 %vm597_vm1, %v1458_v37  ;;  %v1182_v6 = vmul.f32 %v2615_v55, %v1181_v2  ;;  %v1357_v3 = vsel %vm1354_vm6, %v1356_v15, %v1352_v48  ;;  %v1417_v29 = vpack.c.bf16 %v1401_v10, %v1401_v10  ;;  %v3572_v21 = vadd.f32 1.0, %v2621_v16 }
 0x24c   : > { %v1402_v25 = vmul.f32 %v1357_v3, %v3436_v24  ;;  %v1196_v28 = vsub.f32 1.0, %v1195_v1  ;;  %vm1199_vm11 = vweird.f32 %v3530_v23  ;;  %v1203_v31 = vand.u32 2147483647, %v3530_v23 }
 0x24d   : > { %v1183_v51 = vadd.f32 %v2615_v55, %v1182_v6  ;;  %v2623_v30 = vpop.eup %2622  ;;  %v1205_v38 = vand.u32 2147483648, %v3530_v23  ;;  %2628 = vrcp.f32 %v3572_v21  ;;  %vm1200_vm12 = vweird.f32 %v2619_v13 }
 0x24e   : > { %v2625_v12 = vpop.eup %2624  ;;  %v1418_v41 = vpack.c.bf16 %v1402_v25, %v1402_v25  ;;  %v1197_v42 = vmul.f32 %v2619_v13, %v1196_v28  ;;  %v1451_v33 = vunpack.c.l.b16 %v1417_v29  ;;  %v3583_v60 = vadd.f32 1.0, %v2623_v30  ;;  %vm1201_vm13 = vmor %vm1199_vm11, %vm1200_vm12 }
 0x24f   : > { %v1187_v44 = vsel %vm1186_vm10, %v2615_v55, %v1183_v51  ;;  %v3585_v59 = vadd.f32 1.0, %v2625_v12  ;;  %vm1204_vm14 = vcmp.eq.f32.partialorder %v1203_v31, 8.507059e+37  ;;  %v1206_v47 = vor.u32 1.1754944e-38, %v1205_v38 }
 0x250   : > { %v2627_v24 = vpop.eup %2626  ;;  %v1192_v0 = vsel %vm3568_vm8, %v1191_v56, %v1187_v44  ;;  %v1452_v7 = vunpack.c.l.b16 %v1418_v41  ;;  %v1198_v45 = vadd.f32 %v2619_v13, %v1197_v42  ;;  %v1278_v11 = vand.u32 2147483647, %v3559_v32 }
 0x251   : > { %v1391_v34 = vmul.f32 %v1192_v0, %v3470_v20  ;;  %v1270_v35 = vmul.f32 %v2627_v24, %v3559_v32  ;;  %2630 = vrcp.f32 %v3583_v60  ;;  %v1280_v52 = vand.u32 2147483648, %v3559_v32 }
 0x252   : > { %v1461_v18 = vpack.c.b16 %v1452_v7, %v1451_v33  ;;  %v1202_v40 = vsel %vm1201_vm13, %v2619_v13, %v1198_v45  ;;  %2632 = vrcp.f32 %v3585_v59  ;;  %vm1275_vm15 = vweird.f32 %v2627_v24 }
 0x253   : > { %v1271_v57 = vsub.f32 1.0, %v1270_v35  ;;  %v2629_v17 = vpop.eup %2628  ;;  %v1207_v19 = vsel %vm1204_vm14, %v1206_v47, %v1202_v40  ;;  %v1407_v58 = vpack.c.bf16 %v1391_v34, %v1391_v34  ;;  %vm1274_vm2 = vweird.f32 %v3559_v32 }
 0x254   : > { %2370 = vmatmul.msk.bf16.gmra.mxu3 %vm597_vm1, %v1461_v18  ;;  %v1392_v20 = vmul.f32 %v1207_v19, %v3486_v9  ;;  %v1285_v49 = vmul.f32 %v2629_v17, %v3572_v21  ;;  %vm3599_vm3 = vcmp.eq.f32.partialorder %v1278_v11, 8.507059e+37  ;;  %v1281_v27 = vor.u32 1.1754944e-38, %v1280_v52  ;;  %vm1276_vm4 = vmor %vm1274_vm2, %vm1275_vm15 }
 0x255   : > { %v1272_v23 = vmul.f32 %v2627_v24, %v1271_v57  ;;  %v1441_v22 = vunpack.c.l.b16 %v1407_v58  ;;  %vm1290_vm5 = vweird.f32 %v2629_v17  ;;  %v1293_v9 = vand.u32 2147483647, %v3572_v21 }
 0x256   : > { %v1408_v61 = vpack.c.bf16 %v1392_v20, %v1392_v20  ;;  %v1286_v8 = vsub.f32 1.0, %v1285_v49  ;;  %v1295_v54 = vand.u32 2147483648, %v3572_v21  ;;  %vm1289_vm0 = vweird.f32 %v3572_v21 }
 0x257   : > { %v1273_v55 = vadd.f32 %v2627_v24, %v1272_v23  ;;  %v2631_v14 = vpop.eup %2630  ;;  %vm1291_vm6 = vmor %vm1289_vm0, %vm1290_vm5  ;;  %vm1294_vm7 = vcmp.eq.f32.partialorder %v1293_v9, 8.507059e+37  ;;  %v1370_v16 = vand.u32 2147483648, %v3583_v60  ;;  %v1368_v3 = vand.u32 2147483647, %v3583_v60 }
 0x258   : > { %v1442_v62 = vunpack.c.l.b16 %v1408_v61  ;;  %v1287_v63 = vmul.f32 %v2629_v17, %v1286_v8  ;;  %v1360_v37 = vmul.f32 %v2631_v14, %v3583_v60  ;;  %v2633_v4 = vpop.eup %2632  ;;  %v1296_v15 = vor.u32 1.1754944e-38, %v1295_v54 }
 0x259   : > { %v1277_v43 = vsel %vm1276_vm4, %v2627_v24, %v1273_v55  ;;  %v1375_v48 = vmul.f32 %v2633_v4, %v3585_v59  ;;  %vm1365_vm9 = vweird.f32 %v2631_v14  ;;  %vm1364_vm8 = vweird.f32 %v3583_v60 }
 0x25a   : > { %v1282_v32 = vsel %vm3599_vm3, %v1281_v27, %v1277_v43  ;;  %v1456_v5 = vpack.c.b16 %v1442_v62, %v1441_v22  ;;  %v1288_v10 = vadd.f32 %v2629_v17, %v1287_v63  ;;  %v1361_v13 = vsub.f32 1.0, %v1360_v37  ;;  %vm1366_vm10 = vmor %vm1364_vm8, %vm1365_vm9 }
 0x25b   : > { %v1397_v2 = vmul.f32 %v1282_v32, %v3512_v39  ;;  %v1376_v46 = vsub.f32 1.0, %v1375_v48  ;;  %v1385_v51 = vand.u32 2147483648, %v3585_v59  ;;  %v1371_v56 = vor.u32 1.1754944e-38, %v1370_v16 }
 0x25c   : > { %2365 = vmatmul.msk.bf16.gmra.mxu0 %vm597_vm1, %v1456_v5  ;;  %v1292_v6 = vsel %vm1291_vm6, %v2629_v17, %v1288_v10  ;;  %v1362_v1 = vmul.f32 %v2631_v14, %v1361_v13  ;;  %vm1380_vm11 = vweird.f32 %v2633_v4  ;;  %v1383_v30 = vand.u32 2147483647, %v3585_v59 }
 0x25d   : > { %v1297_v29 = vsel %vm1294_vm7, %v1296_v15, %v1292_v6  ;;  %v1413_v21 = vpack.c.bf16 %v1397_v2, %v1397_v2  ;;  %v1377_v28 = vmul.f32 %v2633_v4, %v1376_v46  ;;  %vm1369_vm12 = vcmp.eq.f32.partialorder %v1368_v3, 8.507059e+37 }
 0x25e   : > { %v1398_v39 = vmul.f32 %v1297_v29, %v3525_v36  ;;  %v1363_v25 = vadd.f32 %v2631_v14, %v1362_v1  ;;  %vm1379_vm13 = vweird.f32 %v3585_v59  ;;  %v1386_v36 = vor.u32 1.1754944e-38, %v1385_v51 }
 0x25f   : > { %v1378_v41 = vadd.f32 %v2633_v4, %v1377_v28  ;;  %v1447_v44 = vunpack.c.l.b16 %v1413_v21  ;;  %vm1381_vm14 = vmor %vm1379_vm13, %vm1380_vm11  ;;  %vm1384_vm15 = vcmp.eq.f32.partialorder %v1383_v30, 8.507059e+37  ;;  %vm1558_vm2 = vcmask 257024  }
 0x260   : > { %v1414_v31 = vpack.c.bf16 %v1398_v39, %v1398_v39  ;;  %v1367_v38 = vsel %vm1366_vm10, %v2631_v14, %v1363_v25 }
 0x261   : > { %v1372_v12 = vsel %vm1369_vm12, %v1371_v56, %v1367_v38  ;;  %v1382_v33 = vsel %vm1381_vm14, %v2633_v4, %v1378_v41 }
 0x262   : > { %v1448_v42 = vunpack.c.l.b16 %v1414_v31  ;;  %v1403_v24 = vmul.f32 %v1372_v12, %v3541_v53  ;;  %v1387_v60 = vsel %vm1384_vm15, %v1386_v36, %v1382_v33 }
 0x263   : > { %v1404_v7 = vmul.f32 %v1387_v60, %v3548_v26 }
 0x264   : > { %v1459_v0 = vpack.c.b16 %v1448_v42, %v1447_v44  ;;  %v1419_v45 = vpack.c.bf16 %v1403_v24, %v1403_v24 }
 0x265   : > { %v1420_v34 = vpack.c.bf16 %v1404_v7, %v1404_v7 }
 0x266   : > { %2368 = vmatmul.msk.bf16.gmra.mxu2 %vm597_vm1, %v1459_v0  ;;  %v1453_v35 = vunpack.c.l.b16 %v1419_v45 }
 0x267   : > { %v1454_v47 = vunpack.c.l.b16 %v1420_v34 }
 0x269   : > { %v1462_v11 = vpack.c.b16 %v1454_v47, %v1453_v35 }
 0x26b   : > { %2371 = vmatmul.msk.bf16.gmra.mxu3 %vm597_vm1, %v1462_v11 }
 0x2bc   : > { %v1502_v59 = vpop.f32.mrf.mxu0 }
 0x2bd   : > { %v1542_v18 = vpack.c.bf16 %v1502_v59, %v1502_v59 }
 0x2be   : > { %v1512_v40 = vpop.f32.mrf.mxu2 }
 0x2bf   : > { %v1546_v53 = vpack.c.bf16 %v1512_v40, %v1512_v40  ;;  %v1527_v57 = vpop.f32.mrf.mxu3  ;;  %1559 = vst.msk [vmem:[#allocation2] sm:$0xf] %vm1558_vm2, %v1542_v18 }
 0x2c0   : > { %v1552_v52 = vpack.c.bf16 %v1527_v57, %v1527_v57 }
 0x2c1   : > { %1563 = vst.msk [vmem:[#allocation2 + $0x10] sm:$0xf] %vm1558_vm2, %v1546_v53 }
 0x2c2   : > { %1569 = vst.msk [vmem:[#allocation2 + $0x28] sm:$0xf] %vm1558_vm2, %v1552_v52 }
 0x2c4   : > { %v1504_v26 = vpop.f32.mrf.mxu0 }
 0x2c5   : > { %v1543_v17 = vpack.c.bf16 %v1504_v26, %v1504_v26 }
 0x2c6   : > { %v1514_v19 = vpop.f32.mrf.mxu2 }
 0x2c7   : > { %v1547_v58 = vpack.c.bf16 %v1514_v19, %v1514_v19  ;;  %v1529_v20 = vpop.f32.mrf.mxu3  ;;  %1560 = vst.msk [vmem:[#allocation2 + $0x4] sm:$0xf] %vm1558_vm2, %v1543_v17 }
 0x2c8   : > { %v1553_v23 = vpack.c.bf16 %v1529_v20, %v1529_v20 }
 0x2c9   : > { %1564 = vst.msk [vmem:[#allocation2 + $0x14] sm:$0xf] %vm1558_vm2, %v1547_v58 }
 0x2ca   : > { %1570 = vst.msk [vmem:[#allocation2 + $0x2c] sm:$0xf] %vm1558_vm2, %v1553_v23 }
 0x2ce   : > { %v1517_v49 = vpop.f32.mrf.mxu2 }
 0x2cf   : > { %v1548_v50 = vpack.c.bf16 %v1517_v49, %v1517_v49 }
 0x2d1   : > { %1565 = vst.msk [vmem:[#allocation2 + $0x18] sm:$0xf] %vm1558_vm2, %v1548_v50 }
 0x2d6   : > { %v1519_v61 = vpop.f32.mrf.mxu2 }
 0x2d7   : > { %v1549_v55 = vpack.c.bf16 %v1519_v61, %v1519_v61  ;;  %v1532_v27 = vpop.f32.mrf.mxu3 }
 0x2d8   : > { %v1554_v8 = vpack.c.bf16 %v1532_v27, %v1532_v27 }
 0x2d9   : > { %1566 = vst.msk [vmem:[#allocation2 + $0x1c] sm:$0xf] %vm1558_vm2, %v1549_v55  ;;  %v1507_v14 = vpop.f32.mrf.mxu0 }
 0x2da   : > { %v1544_v22 = vpack.c.bf16 %v1507_v14, %v1507_v14  ;;  %1571 = vst.msk [vmem:[#allocation2 + $0x30] sm:$0xf] %vm1558_vm2, %v1554_v8 }
 0x2dc   : > { %1561 = vst.msk [vmem:[#allocation2 + $0x8] sm:$0xf] %vm1558_vm2, %v1544_v22 }
 0x2df   : > { %v1534_v9 = vpop.f32.mrf.mxu3 }
 0x2e0   : > { %v1555_v54 = vpack.c.bf16 %v1534_v9, %v1534_v9 }
 0x2e1   : > { %v1509_v62 = vpop.f32.mrf.mxu0 }
 0x2e2   : > { %v1545_v43 = vpack.c.bf16 %v1509_v62, %v1509_v62  ;;  %1572 = vst.msk [vmem:[#allocation2 + $0x34] sm:$0xf] %vm1558_vm2, %v1555_v54 }
 0x2e4   : > { %1562 = vst.msk [vmem:[#allocation2 + $0xc] sm:$0xf] %vm1558_vm2, %v1545_v43 }
 0x2e9   : > { %v1522_v63 = vpop.f32.mrf.mxu2 }
 0x2ea   : > { %v1550_v37 = vpack.c.bf16 %v1522_v63, %v1522_v63 }
 0x2ec   : > { %1567 = vst.msk [vmem:[#allocation2 + $0x20] sm:$0xf] %vm1558_vm2, %v1550_v37 }
 0x2ee   : > { %v1537_v4 = vpop.f32.mrf.mxu3 }
 0x2ef   : > { %v1556_v32 = vpack.c.bf16 %v1537_v4, %v1537_v4 }
 0x2f1   : > { %v1524_v5 = vpop.f32.mrf.mxu2  ;;  %1573 = vst.msk [vmem:[#allocation2 + $0x38] sm:$0xf] %vm1558_vm2, %v1556_v32 }
 0x2f2   : > { %v1551_v10 = vpack.c.bf16 %v1524_v5, %v1524_v5 }
 0x2f4   : > { %1568 = vst.msk [vmem:[#allocation2 + $0x24] sm:$0xf] %vm1558_vm2, %v1551_v10 }
 0x2f6   : > { %v1539_v2 = vpop.f32.mrf.mxu3 }
 0x2f7   : > { %v1557_v13 = vpack.c.bf16 %v1539_v2, %v1539_v2 }
 0x2f9   : > { %1574 = vst.msk [vmem:[#allocation2 + $0x3c] sm:$0xf] %vm1558_vm2, %v1557_v13 }
 0x2fa PF: > { %v2433_v16 = vld [vmem:[#allocation2 + $0x30] sm:$0xff]  ;;  %v2432_v48 = vld [vmem:[#allocation2 + $0x28] sm:$0xff]  ;;  %v1575_v1 = vld [vmem:[%s2974_s27] sm:$0xff]  ;;  %vm1769_vm1 = vcmask 130048   ;;  %vm2166_vm3 = vcmask 261120   ;;  %s2421_s27 = sshll.u32 %s2794_s25, 5 }
 0x2fb   : > { %v2431_v15 = vld [vmem:[#allocation2 + $0x20] sm:$0xff]  ;;  %v1576_v3 = vpack.c.bf16 %v1575_v1, %v1575_v1  ;;  %v2429_v39 = vld [vmem:[#allocation2 + $0x10] sm:$0xff]  ;;  %v2428_v21 = vld [vmem:[#allocation2 + $0x8] sm:$0xff]  ;;  %s2189_s7 = sadd.s32 %s2790_s24, %s2421_s27  ;;  %s2192_s30 = sshll.u32 %s2976_s14, 4  ;;  %s2193_s30 = int_to_ptr.vmem [resolvable:$true] %s2192_s30 }
 0x2fc   : > { %2634 = vxpose.binary.xlu0.c.b16.start.end [1/2] (short) (narrow) %v2433_v16, %v2431_v15, 32  ;;  %v2427_v46 = vld [vmem:[#allocation2] sm:$0xff]  ;;  %v2430_v25 = vld [vmem:[#allocation2 + $0x18] sm:$0xff]  ;;  %s2422_s16 = sshll.u32 %s2189_s7, 3  ;;  %s3787_s10 = sand.u32 1, %s2770_s19  }
 0x2fd   : > { %v1819_v29 = vsel %vm1769_vm1, %v1576_v3, 0  ;;  %s2191_s12 = scalar_lea.hbm %s3733_s5, %s2422_s16  ;;  %s2176_s29 = scalar_lea.sflag [#allocation5], %s3787_s10 }
 0x2fe   : > { %2438 = vmatpush.bf16.xpose.msra.mxu2 %v1819_v29  ;;  %2439 = vmatpush.bf16.xpose.msra.mxu3 %v1819_v29  ;;  %s2194_s13 = sshll.u32 %s2191_s12, 4  ;;  %s2704_s8 = scalar_lea.hbm %s3733_s5, 512  ;;  %s2195_s13 = int_to_ptr.hbm [resolvable:$true] %s2194_s13 }
 0x2ff   : > { %1828 = vmatpush.bf16.xpose.msra.mxu0 %v1819_v29  ;;  %2437 = vmatpush.bf16.xpose.msra.mxu1 %v1819_v29  ;;  %s2698_s25 = sshra.s32 %s2195_s13, 4  ;;  %s2699_s25 = int_to_ptr.hbm [resolvable:$true] %s2698_s25 }
 0x300   : > { %v2434_v6 = vld [vmem:[#allocation2 + $0x38] sm:$0xff]  ;;  %s2700_s26 = scalar_lea.hbm %s2699_s25, 64  ;;  %p2705_p13 = scmp.lt.s32.totalorder %s2699_s25, %s3733_s5 }
 0x301   : > { %2644 = vxpose.binary.xlu1.c.b16.start.end [1/2] (short) (narrow) %v2434_v6, %v2432_v48, 32  ;;  %p2701_p7 = scmp.ne.s32.totalorder %s2699_s25, %s2700_s26  ;;  %p2706_p0 = scmp.lt.s32.totalorder %s2704_s8, %s2700_s26 }
 0x303   : > { %p2702_p10 = pnand %p2701_p7, %p2935_p12  ;;  %p2707_p1 = por %p2706_p0, %p2705_p13 }
 0x305   : > { %p2703_p11 = pneg %p2702_p10 }
 0x307   : > { %p2708_p4 = pnand %p2707_p1, %p2703_p11 }
 0x31c   : > { %2639 = vxpose.binary.xlu0.c.b16.start.end [1/2] (short) (narrow) %v2429_v39, %v2427_v46, 32 }
 0x321   : > { %2649 = vxpose.binary.xlu1.c.b16.start.end [1/2] (short) (narrow) %v2430_v25, %v2428_v21, 32 }
 0x3a8   : > { %v2635_v51 = vpop.trf.xlu0 }
 0x3a9   : > { %2412 = vmatmul.msk.bf16.vlgmr.msra.gmra.mxu2 %vm1769_vm1, %v2635_v51 }
 0x3ad   : > { %v2645_v30 = vpop.trf.xlu1 }
 0x3b0   : > { %v2636_v56 = vpop.trf.xlu0 }
 0x3b1   : > { %2416 = vmatmul.msk.bf16.vlgmr.msra.gmra.mxu3 %vm1769_vm1, %v2636_v56 }
 0x3b5   : > { %v2646_v38 = vpop.trf.xlu1 }
 0x3b8   : > { %v2637_v28 = vpop.trf.xlu0 }
 0x3b9   : > { %2413 = vmatmul.msk.bf16.gmra.mxu2 %vm1769_vm1, %v2637_v28 }
 0x3bd   : > { %v2647_v41 = vpop.trf.xlu1 }
 0x3c0   : > { %v2638_v31 = vpop.trf.xlu0 }
 0x3c1   : > { %2417 = vmatmul.msk.bf16.gmra.mxu3 %vm1769_vm1, %v2638_v31 }
 0x3c5   : > { %v2648_v42 = vpop.trf.xlu1 }
 0x3c8   : > { %v2640_v12 = vpop.trf.xlu0 }
 0x3c9   : > { %2404 = vmatmul.msk.bf16.vlgmr.msra.gmra.mxu0 %vm1769_vm1, %v2640_v12  ;;  %2414 = vmatmul.msk.bf16.gmra.mxu2 %vm1769_vm1, %v2645_v30 }
 0x3cd   : > { %v2650_v33 = vpop.trf.xlu1 }
 0x3d0   : > { %v2641_v44 = vpop.trf.xlu0 }
 0x3d1   : > { %2408 = vmatmul.msk.bf16.vlgmr.msra.gmra.mxu1 %vm1769_vm1, %v2641_v44  ;;  %2418 = vmatmul.msk.bf16.gmra.mxu3 %vm1769_vm1, %v2646_v38 }
 0x3d5   : > { %v2651_v0 = vpop.trf.xlu1 }
 0x3d8   : > { %v2642_v36 = vpop.trf.xlu0 }
 0x3d9   : > { %2405 = vmatmul.msk.bf16.gmra.mxu0 %vm1769_vm1, %v2642_v36  ;;  %2415 = vmatmul.msk.bf16.gmra.mxu2 %vm1769_vm1, %v2647_v41 }
 0x3dd   : > { %v2652_v60 = vpop.trf.xlu1 }
 0x3e0   : > { %v2643_v24 = vpop.trf.xlu0 }
 0x3e1   : > { %2409 = vmatmul.msk.bf16.gmra.mxu1 %vm1769_vm1, %v2643_v24  ;;  %2419 = vmatmul.msk.bf16.gmra.mxu3 %vm1769_vm1, %v2648_v42 }
 0x3e5   : > { %v2653_v7 = vpop.trf.xlu1 }
 0x3e9   : > { %2406 = vmatmul.msk.bf16.gmra.mxu0 %vm1769_vm1, %v2650_v33 }
 0x3f1   : > { %2410 = vmatmul.msk.bf16.gmra.mxu1 %vm1769_vm1, %v2651_v0 }
 0x3f9   : > { %2407 = vmatmul.msk.bf16.gmra.mxu0 %vm1769_vm1, %v2652_v60 }
 0x401   : > { %2411 = vmatmul.msk.bf16.gmra.mxu1 %vm1769_vm1, %v2653_v7 }
 0x42c   : > { %v1870_v45 = vpop.f32.mrf.mxu2 }
 0x434   : > { %v1872_v35 = vpop.f32.mrf.mxu2  ;;  %v1890_v23 = vpop.f32.mrf.mxu3 }
 0x43c   : > { %v1875_v59 = vpop.f32.mrf.mxu2  ;;  %v1892_v55 = vpop.f32.mrf.mxu3 }
 0x444   : > { %v1877_v52 = vpop.f32.mrf.mxu2  ;;  %v1895_v22 = vpop.f32.mrf.mxu3 }
 0x446   : > { %v1830_v34 = vpop.f32.mrf.mxu0 }
 0x447   : > { %1910 = vxpose.xlu2.b32.start [1/4] (short) (narrow) %v1830_v34, 8 }
 0x44c   : > { %v1880_v17 = vpop.f32.mrf.mxu2  ;;  %v1897_v54 = vpop.f32.mrf.mxu3 }
 0x44e   : > { %v1832_v47 = vpop.f32.mrf.mxu0  ;;  %v1850_v11 = vpop.f32.mrf.mxu1 }
 0x44f   : > { %1974 = vxpose.xlu0.b32.start [1/4] (short) (narrow) %v1850_v11, 8  ;;  %1911 = vxpose.xlu2.b32.cont [2/4] (short) (narrow) %v1832_v47, 8 }
 0x454   : > { %v1882_v58 = vpop.f32.mrf.mxu2  ;;  %v1900_v43 = vpop.f32.mrf.mxu3 }
 0x456   : > { %v1835_v18 = vpop.f32.mrf.mxu0  ;;  %v1852_v40 = vpop.f32.mrf.mxu1 }
 0x457   : > { %1975 = vxpose.xlu0.b32.cont [2/4] (short) (narrow) %v1852_v40, 8  ;;  %1912 = vxpose.xlu2.b32.cont [3/4] (short) (narrow) %v1835_v18, 8 }
 0x45c   : > { %v1885_v49 = vpop.f32.mrf.mxu2  ;;  %v1902_v63 = vpop.f32.mrf.mxu3 }
 0x45e   : > { %v1837_v53 = vpop.f32.mrf.mxu0  ;;  %v1855_v57 = vpop.f32.mrf.mxu1 }
 0x45f   : > { %1976 = vxpose.xlu0.b32.cont [3/4] (short) (narrow) %v1855_v57, 8  ;;  %1913 = vxpose.xlu2.b32.end [4/4] (short) (narrow) %v1837_v53, 8 }
 0x464   : > { %v1887_v27 = vpop.f32.mrf.mxu2  ;;  %v1905_v37 = vpop.f32.mrf.mxu3 }
 0x466   : > { %v1857_v26 = vpop.f32.mrf.mxu1  ;;  %v1840_v61 = vpop.f32.mrf.mxu0 }
 0x467   : > { %1977 = vxpose.xlu0.b32.end [4/4] (short) (narrow) %v1857_v26, 8  ;;  %2038 = vxpose.xlu2.b32.start [1/4] (short) (narrow) %v1870_v45, 8 }
 0x46c   : > { %v1907_v4 = vpop.f32.mrf.mxu3 }
 0x46e   : > { %v1860_v19 = vpop.f32.mrf.mxu1  ;;  %v1842_v14 = vpop.f32.mrf.mxu0 }
 0x46f   : > { %2070 = vxpose.xlu0.b32.start [1/4] (short) (narrow) %v1880_v17, 8  ;;  %2006 = vxpose.xlu1.b32.start [1/4] (short) (narrow) %v1860_v19, 8 }
 0x470   : > { %2039 = vxpose.xlu2.b32.cont [2/4] (short) (narrow) %v1872_v35, 8 }
 0x476   : > { %v1862_v20 = vpop.f32.mrf.mxu1  ;;  %v1845_v9 = vpop.f32.mrf.mxu0 }
 0x477   : > { %2071 = vxpose.xlu0.b32.cont [2/4] (short) (narrow) %v1882_v58, 8  ;;  %2007 = vxpose.xlu1.b32.cont [2/4] (short) (narrow) %v1862_v20, 8 }
 0x478   : > { %2040 = vxpose.xlu2.b32.cont [3/4] (short) (narrow) %v1875_v59, 8 }
 0x47e   : > { %v1865_v50 = vpop.f32.mrf.mxu1  ;;  %v1847_v62 = vpop.f32.mrf.mxu0 }
 0x47f   : > { %2072 = vxpose.xlu0.b32.cont [3/4] (short) (narrow) %v1885_v49, 8  ;;  %2008 = vxpose.xlu1.b32.cont [3/4] (short) (narrow) %v1865_v50, 8 }
 0x480   : > { %2041 = vxpose.xlu2.b32.end [4/4] (short) (narrow) %v1877_v52, 8 }
 0x486   : > { %v1867_v8 = vpop.f32.mrf.mxu1 }
 0x487   : > { %2073 = vxpose.xlu0.b32.end [4/4] (short) (narrow) %v1887_v27, 8  ;;  %2009 = vxpose.xlu1.b32.end [4/4] (short) (narrow) %v1867_v8, 8 }
 0x488   : > { %1942 = vxpose.xlu2.b32.start [1/4] (short) (narrow) %v1840_v61, 8 }
 0x48f   : > { %2102 = vxpose.xlu1.b32.start [1/4] (short) (narrow) %v1890_v23, 8 }
 0x490   : > { %1943 = vxpose.xlu2.b32.cont [2/4] (short) (narrow) %v1842_v14, 8 }
 0x497   : > { %2103 = vxpose.xlu1.b32.cont [2/4] (short) (narrow) %v1892_v55, 8 }
 0x498   : > { %1944 = vxpose.xlu2.b32.cont [3/4] (short) (narrow) %v1845_v9, 8 }
 0x49f   : > { %2104 = vxpose.xlu1.b32.cont [3/4] (short) (narrow) %v1895_v22, 8 }
 0x4a0   : > { %1945 = vxpose.xlu2.b32.end [4/4] (short) (narrow) %v1847_v62, 8 }
 0x4a7   : > { %2105 = vxpose.xlu1.b32.end [4/4] (short) (narrow) %v1897_v54, 8 }
 0x4a8   : > { %2134 = vxpose.xlu2.b32.start [1/4] (short) (narrow) %v1900_v43, 8 }
 0x4b0   : > { %2135 = vxpose.xlu2.b32.cont [2/4] (short) (narrow) %v1902_v63, 8 }
 0x4b8   : > { %2136 = vxpose.xlu2.b32.cont [3/4] (short) (narrow) %v1905_v37, 8 }
 0x4c0   : > { %2137 = vxpose.xlu2.b32.end [4/4] (short) (narrow) %v1907_v4, 8 }
 0x4e0   : > { %v1926_v32 = vpop.trf.xlu2 }
 0x4e1   : > { %2167 = vst.msk [vmem:[%s2976_s14] sm:$0xff] %vm2166_vm3, %v1926_v32 }
 0x4f3   : > { %v1990_v5 = vpop.trf.xlu0 }
 0x4f4   : > { %2169 = vst.msk [vmem:[%s2976_s14 + $0x10] sm:$0xff] %vm2166_vm3, %v1990_v5 }
 0x501   : > { %v2054_v10 = vpop.trf.xlu2 }
 0x502   : > { %2171 = vst.msk [vmem:[%s2976_s14 + $0x20] sm:$0xff] %vm2166_vm3, %v2054_v10 }
 0x513   : > { %v2022_v2 = vpop.trf.xlu1  ;;  %v2086_v13 = vpop.trf.xlu0 }
 0x514   : > { %2170 = vst.msk [vmem:[%s2976_s14 + $0x18] sm:$0xff] %vm2166_vm3, %v2022_v2 }
 0x515   : > { %2172 = vst.msk [vmem:[%s2976_s14 + $0x28] sm:$0xff] %vm2166_vm3, %v2086_v13 }
 0x521   : > { %v1958_v15 = vpop.trf.xlu2 }
 0x522   : > { %2168 = vst.msk [vmem:[%s2976_s14 + $0x8] sm:$0xff] %vm2166_vm3, %v1958_v15 }
 0x533   : > { %v2118_v16 = vpop.trf.xlu1 }
 0x534   : > { %2173 = vst.msk [vmem:[%s2976_s14 + $0x30] sm:$0xff] %vm2166_vm3, %v2118_v16 }
 0x541   : > { %v2150_v48 = vpop.trf.xlu2 }
 0x542   : > { %2174 = vst.msk [vmem:[%s2976_s14 + $0x38] sm:$0xff] %vm2166_vm3, %v2150_v48 }
 0x543   : > { %2711 = shalt.err (!%p2708_p4)
}
 0x544   : > { %s2820_s14 = smov 128   ;;  %s2821_s7 = smov 512  }
 0x545   : > { %s2822_s16 = smov 8  }
 0x546   : > { %2442 = dma.vmem_to_hbm [thread:$0]  (%p2935_p12), %s2193_s30, 1024, %s2195_s13, %s2176_s29, %s2820_s14, %s2821_s7, %s2822_s16  }
 0x547 PF: > { %p2453_p5 = scmp.ge.s32.totalorder %s2806_s28, 2  ;;  %s2209_s17 = sand.u32 1, %s2766_s18  }
 0x548   : > { %s2210_s6 = scalar_lea.sflag [#allocation5], %s2209_s17 }
 0x549   : > { %p2449_p6 = pnand %p2453_p5, %p2948_p2 }
 0x54b   : > { %p2450_p8 = pneg %p2449_p6 }
 0x54d   : > { %2761 = dma.done.wait (%p2450_p8), %s2210_s6, 1024  }
 0x54e   : > { %2763 = vsyncadd (%p2450_p8), %s2210_s6, 4294966272  ;;  %s21_s28 = sadd.s32 1, %s2806_s28   ;;  %s3788_s12 = sld [smem:[#allocation14_spill]] }
 0x54f   : > { %p18_p3 = scmp.ge.s32.totalorder %s21_s28, 10   ;;  %s3789_s15 = sld [smem:[#allocation13_spill]] }
 0x550   : > { %s3790_s24 = sld [smem:[#allocation9_spill]]  ;;  %s3794_s18 = smov %s2770_s19 }
 0x551   : > { %s3791_s25 = sld [smem:[#allocation10_spill]]  ;;  %s3795_s19 = smov %s2774_s20 }
 0x552   : > { %s3792_s26 = sld [smem:[#allocation11_spill]]  ;;  %s3797_s21 = smov %s2782_s22 }
 0x553   : > { %s3793_s27 = sld [smem:[#allocation12_spill]]  ;;  %s3798_s22 = smov %s2786_s23 }
 0x554   : > { %s3796_s20 = smov %s3788_s12  ;;  %20 = sbr.rel (!%p18_p3) target bundleno = 9 (0x9), region = 98 }
 0x555   : > { %s3799_s23 = smov %s3789_s15 }
 0x559   :  { %2216 = vsyncpa [#allocation4], 1 }
 0x55a   :  { %2218 = vsyncpa [#allocation4 + $0x1], 1 }
 0x55b   :  { %2219 = vsyncpa [#allocation5], 1 }
 0x55c   :  { %2221 = vsyncpa [#allocation5 + $0x1], 1 }

</bundles_post_ra>
